<compile_context>
chip_gen: v7x
topology: tpu7x:2x2x1
jax: 0.10.0
libtpu: 0.0.40
codegen_flags: <defaults>
</compile_context>

<pallas_src>
import functools
import math

import jax
import jax.numpy as jnp
import numpy as np
from jax import lax
from jax.experimental import pallas as pl
from jax.experimental.pallas import tpu as pltpu

# Make the pure-JAX reference (and any wrapper-side math) run exact f32 on TPU.
jax.config.update("jax_default_matmul_precision", "highest")


def x3d_kernel(fgeo_ref, gp_ref, gf_ref,
               wpre_ref, vech_ref, wq_ref, wwg_ref, bwg_ref, wpm_ref,
               out_ref, *, n, k, C):
    f32 = jnp.float32
    hi = jax.lax.Precision.HIGHEST
    nk = n * k

    # packed (7, H) parameter block: [b_pre; gamma; beta; b_v; W_v^T(3,H)]
    b_pre = vech_ref[0:1, :]
    gamma = vech_ref[1:2, :]
    beta = vech_ref[2:3, :]
    b_v = vech_ref[3:4, :]
    wv_t = vech_ref[4:7, :]                                        # (3, H)

    # ---- pre_embed: Linear + LayerNorm (eps = 1e-5) ----
    cond = jnp.dot(fgeo_ref[...], wpre_ref[...],
                   preferred_element_type=f32, precision=hi) + b_pre     # (n, H)
    mu = jnp.mean(cond, axis=-1, keepdims=True)
    var = jnp.mean((cond - mu) ** 2, axis=-1, keepdims=True)
    cond = (cond - mu) * lax.rsqrt(var + 1e-5) * gamma + beta            # (n, H)

    # ---- denoise attention over the k neighbours of each point ----
    gp2 = gp_ref[...]                                              # (3, n*k) lane-dense
    gp3 = gp2.reshape(3, n, k)                                     # small in-VMEM relayout
    # fused q-projection: qproj[:, 0:3] = cond @ W_q, qproj[:, 3] = cond @ b_q
    qproj = jnp.dot(cond, wq_ref[...], preferred_element_type=f32,
                    precision=hi)                                  # (n, 4)
    qk = (qproj[:, 0:1] * gp3[0] + qproj[:, 1:2] * gp3[1]
          + qproj[:, 2:3] * gp3[2] + qproj[:, 3:4])                # (n, k)
    qk = qk - jnp.max(qk, axis=-1, keepdims=True)
    e = jnp.exp(qk)
    attn = e / jnp.sum(e, axis=-1, keepdims=True)                  # exact softmax
    # value side: s[p, c] = sum_j attn[p, j] * p_c[p, j];  ec = s @ W_v^T + b_v
    s = jnp.concatenate(
        [jnp.sum(attn * gp3[c], axis=-1, keepdims=True) for c in range(3)],
        axis=-1)                                                   # (n, 3)
    cond = cond + jnp.dot(s, wv_t, preferred_element_type=f32,
                          precision=hi) + b_v                      # (n, H)

    # ---- weight_gen (columns pre-permuted to [coord, out_channel]) ----
    pw = jnp.dot(cond, wwg_ref[...], preferred_element_type=f32,
                 precision=hi) + bwg_ref[...]                      # (n, 3C)

    # ---- modu normalisation over the n points of this batch (plain per-tile sum) ----
    d = lax.rsqrt(jnp.sum(pw * pw, axis=0, keepdims=True) * (1.0 / n))   # (1, 3C)
    pwT = (pw * d).T                                               # (3C, n)

    # ---- dynamic per-point grouped 1x1 conv + pe_mul, fused broadcast FMAs ----
    gf2 = gf_ref[...]                                              # (C, n*k)
    dyn = jnp.zeros((C, nk), f32)
    mul = jnp.zeros((C, nk), f32)
    for c in range(3):                                             # 3 coords, vectorised in C
        gpc = gp2[c:c + 1, :]                                      # (1, n*k)
        # repeat each point's weight k times along the lane axis (no expand matmul)
        wexp = jnp.broadcast_to(pwT[c * C:(c + 1) * C, :][:, :, None],
                                (C, n, k)).reshape(C, nk)          # (C, n*k)
        dyn = dyn + wexp * gpc
        mul = mul + wpm_ref[:, c:c + 1] * gpc
    # one lane-dense store of the whole (C, n*k) tile
    out_ref[...] = (mul + wpm_ref[:, 3:4]) * gf2 + dyn


def x3d_forward(fgeo, group_p, group_f, params):
    b, three, n, k = group_p.shape
    assert three == 3
    B, es = fgeo.shape
    assert B == b * n
    H = params['w_pre'].shape[0]
    C = params['w_pm'].shape[0]
    outc = 3 * C
    nk = n * k

    # lane-dense slab views: last two dims merge -> free reshape, no HBM transpose
    gp2 = group_p.reshape(b, 3, nk)
    gf2 = group_f.reshape(b, C, nk)

    # --- packed / pre-transposed parameters (all tiny) ---
    w_pre_t = params['w_pre'].T                                    # (es, H)
    vec_h = jnp.concatenate([
        params['b_pre'].reshape(1, H), params['gamma'].reshape(1, H),
        params['beta'].reshape(1, H), params['b_v'].reshape(1, H),
        params['w_v'].T], axis=0)                                  # (7, H)
    wq_aug = jnp.concatenate([params['w_q'], params['b_q'][:, None]], axis=1)  # (H, 4)
    # permute weight_gen rows from [oc, coord] ordering to [coord, oc] ordering
    perm = jnp.arange(outc).reshape(C, 3).T.reshape(-1)            # perm[c*C+oc] = 3*oc + c
    w_wg_t = params['w_wg'][perm, :].T                             # (H, 3C)
    b_wg = params['b_wg'][perm].reshape(1, outc)                   # (1, 3C)
    w_pm_aug = jnp.concatenate([params['w_pm'],
                                params['b_pm'].reshape(C, 1)], axis=1)  # (C, 4)

    kernel = functools.partial(x3d_kernel, n=n, k=k, C=C)

    # advisory cost estimate for XLA scheduling around the kernel
    flops = (2 * B * es * H + 2 * B * H * 4 + 2 * B * 3 * H
             + 2 * B * H * outc + 10 * B * k + 8 * C * B * k)
    bytes_accessed = 4 * (B * es + (3 + 2 * C) * B * k
                          + es * H + 11 * H + H * outc + outc + 4 * C)
    cost = pl.CostEstimate(flops=int(flops), transcendentals=int(B * k),
                           bytes_accessed=int(bytes_accessed))

    # per-generation VMEM budget (64 MiB on v7x, 128 MiB on v5e/v6e)
    try:
        vmem_cap = int(pltpu.get_tpu_info().vmem_capacity_bytes)
    except Exception:
        vmem_cap = 64 * 1024 * 1024
    vmem_limit = int(min(int(vmem_cap * 0.75), 100 * 1024 * 1024))

    def full(shape):
        return pl.BlockSpec(shape, lambda i, _s=shape: (0,) * len(_s))

    out2 = pl.pallas_call(
        kernel,
        grid=(b,),
        out_shape=jax.ShapeDtypeStruct((b, C, nk), jnp.float32),
        in_specs=[
            pl.BlockSpec((n, es), lambda i: (i, 0)),            # fgeo rows of batch i
            pl.BlockSpec((None, 3, nk), lambda i: (i, 0, 0)),   # group_p slab of batch i
            pl.BlockSpec((None, C, nk), lambda i: (i, 0, 0)),   # group_f slab of batch i
            full((es, H)), full((7, H)), full((H, 4)),
            full((H, outc)), full((1, outc)), full((C, 4)),
        ],
        out_specs=pl.BlockSpec((None, C, nk), lambda i: (i, 0, 0)),
        compiler_params=pltpu.CompilerParams(
            dimension_semantics=("parallel",),
            vmem_limit_bytes=vmem_limit),
        cost_estimate=cost,
    )(fgeo, gp2, gf2, w_pre_t, vec_h, wq_aug, w_wg_t, b_wg, w_pm_aug)

    # (b, C, n*k) -> (b, C, n, k): free reshape, no transpose
    return out2.reshape(b, C, n, k)


def reference(fgeo, group_p, group_f, params):
    """Pure-JAX mirror of the PyTorch forward (modu!='false', denoise!='false')."""
    b, _, n, k = group_p.shape
    B = b * n
    C = params['w_pm'].shape[0]
    cond = fgeo @ params['w_pre'].T + params['b_pre']
    mu = cond.mean(-1, keepdims=True)
    var = ((cond - mu) ** 2).mean(-1, keepdims=True)
    cond = (cond - mu) / jnp.sqrt(var + 1e-5) * params['gamma'] + params['beta']
    pe_mul = (jnp.einsum('oc,bcnk->bonk', params['w_pm'], group_p)
              + params['b_pm'][None, :, None, None])
    extent_p = group_p.transpose(0, 2, 1, 3).reshape(B, 3, k)
    eq = jnp.einsum('hc,bck->bhk', params['w_q'], extent_p) + params['b_q'][None, :, None]
    ev = jnp.einsum('hc,bck->bhk', params['w_v'], extent_p) + params['b_v'][None, :, None]
    qk = jnp.einsum('bhk,bh->bk', eq, cond)
    a = jax.nn.softmax(qk, axis=-1)
    ec = jnp.einsum('bk,bhk->bh', a, ev)
    cond = cond + ec
    pw = cond @ params['w_wg'].T + params['b_wg']
    pwv = pw.reshape(b, n, -1)
    d = jax.lax.rsqrt(jnp.sum((pwv / math.sqrt(n)) ** 2, axis=1, keepdims=True))
    pwv = pwv * d
    w = pwv.reshape(B, 3 * C)[:, :3 * C].reshape(b, n, C, 3)
    pe_dyn = jnp.einsum('bnoc,bcnk->bonk', w, group_p)
    return pe_mul * group_f + pe_dyn


if __name__ == "__main__":
    b, n, k = 2, 16, 8
    es, H, C = 6, 32, 4          # eschannel, hidden_dim, outchannel
    outc = 3 * C                 # modu != 'false'
    B = b * n

    key = jax.random.PRNGKey(0)
    ks = jax.random.split(key, 13)

    def u(kk, shape, fan_in):
        s = 1.0 / math.sqrt(fan_in)
        return jax.random.uniform(kk, shape, jnp.float32, -s, s)

    params = {
        'w_pre': u(ks[0], (H, es), es), 'b_pre': u(ks[1], (H,), es),
        'gamma': jnp.ones((H,), jnp.float32), 'beta': jnp.zeros((H,), jnp.float32),
        'w_q': u(ks[2], (H, 3), 3), 'b_q': u(ks[3], (H,), 3),
        'w_v': u(ks[4], (H, 3), 3), 'b_v': u(ks[5], (H,), 3),
        'w_wg': u(ks[6], (outc, H), H), 'b_wg': u(ks[7], (outc,), H),
        'w_pm': u(ks[8], (C, 3), 3), 'b_pm': u(ks[9], (C,), 3),
    }

    fgeo = jax.random.normal(ks[10], (B, es), jnp.float32)
    group_p = jax.random.normal(ks[11], (b, 3, n, k), jnp.float32)
    group_f = jax.random.normal(ks[12], (b, C, n, k), jnp.float32)

    out = x3d_forward(fgeo, group_p, group_f, params)
    out = jax.block_until_ready(out)

    ref = reference(fgeo, group_p, group_f, params)
    np.testing.assert_allclose(np.asarray(out), np.asarray(ref), rtol=2e-3, atol=2e-3)
    print("KERNEL_OK")
</pallas_src>

<mosaic_0001>
module attributes {stable_mosaic.version = 11 : i64} {
  func.func @x3d_kernel(%arg0: i32, %arg1: memref<16x6xf32, #tpu.memory_space<vmem>>, %arg2: memref<1x3x128xf32, #tpu.memory_space<vmem>>, %arg3: memref<1x4x128xf32, #tpu.memory_space<vmem>>, %arg4: memref<6x32xf32, #tpu.memory_space<vmem>>, %arg5: memref<7x32xf32, #tpu.memory_space<vmem>>, %arg6: memref<32x4xf32, #tpu.memory_space<vmem>>, %arg7: memref<32x12xf32, #tpu.memory_space<vmem>>, %arg8: memref<1x12xf32, #tpu.memory_space<vmem>>, %arg9: memref<4x4xf32, #tpu.memory_space<vmem>>, %arg10: memref<1x4x128xf32, #tpu.memory_space<vmem>>) attributes {dimension_semantics = [#tpu.dimension_semantics<parallel>], iteration_bounds = array<i64: 2>, scalar_prefetch = 0 : i64, scratch_operands = 0 : i64, tpu.core_type = #tpu.core_type<tc>, window_params = [{transform_indices = @transform_0, window_bounds = array<i64: 16, 6>}, {transform_indices = @transform_1, window_bounds = array<i64: 1, 3, 128>}, {transform_indices = @transform_2, window_bounds = array<i64: 1, 4, 128>}, {pipeline_mode = #tpu.pipeline_mode<synchronous>, transform_indices = @transform_3, window_bounds = array<i64: 6, 32>}, {pipeline_mode = #tpu.pipeline_mode<synchronous>, transform_indices = @transform_4, window_bounds = array<i64: 7, 32>}, {pipeline_mode = #tpu.pipeline_mode<synchronous>, transform_indices = @transform_5, window_bounds = array<i64: 32, 4>}, {pipeline_mode = #tpu.pipeline_mode<synchronous>, transform_indices = @transform_6, window_bounds = array<i64: 32, 12>}, {pipeline_mode = #tpu.pipeline_mode<synchronous>, transform_indices = @transform_7, window_bounds = array<i64: 1, 12>}, {pipeline_mode = #tpu.pipeline_mode<synchronous>, transform_indices = @transform_8, window_bounds = array<i64: 4, 4>}, {transform_indices = @transform_9, window_bounds = array<i64: 1, 4, 128>}]} {
    %c0 = arith.constant 0 : index
    %c0_0 = arith.constant 0 : index
    %0 = vector.load %arg5[%c0, %c0_0] : memref<7x32xf32, #tpu.memory_space<vmem>>, vector<1x32xf32>
    %c1 = arith.constant 1 : index
    %c0_1 = arith.constant 0 : index
    %1 = vector.load %arg5[%c1, %c0_1] : memref<7x32xf32, #tpu.memory_space<vmem>>, vector<1x32xf32>
    %c2 = arith.constant 2 : index
    %c0_2 = arith.constant 0 : index
    %2 = vector.load %arg5[%c2, %c0_2] : memref<7x32xf32, #tpu.memory_space<vmem>>, vector<1x32xf32>
    %c3 = arith.constant 3 : index
    %c0_3 = arith.constant 0 : index
    %3 = vector.load %arg5[%c3, %c0_3] : memref<7x32xf32, #tpu.memory_space<vmem>>, vector<1x32xf32>
    %c4 = arith.constant 4 : index
    %c0_4 = arith.constant 0 : index
    %4 = vector.load %arg5[%c4, %c0_4] : memref<7x32xf32, #tpu.memory_space<vmem>>, vector<3x32xf32>
    %c0_5 = arith.constant 0 : index
    %c0_6 = arith.constant 0 : index
    %5 = vector.load %arg1[%c0_5, %c0_6] : memref<16x6xf32, #tpu.memory_space<vmem>>, vector<16x6xf32>
    %c0_7 = arith.constant 0 : index
    %c0_8 = arith.constant 0 : index
    %6 = vector.load %arg4[%c0_7, %c0_8] : memref<6x32xf32, #tpu.memory_space<vmem>>, vector<6x32xf32>
    %cst = arith.constant dense<0.000000e+00> : vector<16x32xf32>
    %7 = tpu.matmul %5, %6, %cst {dimension_numbers = #tpu.dot_dimension_numbers<[1], [0], [0], [1], [0, 0, 1, 1], [], []>, precision = #tpu.contract_precision<fp32>} : vector<16x6xf32>, vector<6x32xf32>, vector<16x32xf32> -> vector<16x32xf32>
    %8 = vector.broadcast %0 : vector<1x32xf32> to vector<16x32xf32>
    %9 = arith.addf %7, %8 : vector<16x32xf32>
    %cst_9 = arith.constant dense<0.000000e+00> : vector<16xf32>
    %10 = vector.multi_reduction <add>, %9, %cst_9 [1] : vector<16x32xf32> to vector<16xf32>
    %11 = vector.shape_cast %10 : vector<16xf32> to vector<16x1xf32>
    %cst_10 = arith.constant 3.200000e+01 : f32
    %12 = vector.broadcast %cst_10 : f32 to vector<16x1xf32>
    %13 = arith.divf %11, %12 : vector<16x1xf32>
    %14 = vector.broadcast %13 : vector<16x1xf32> to vector<16x32xf32>
    %15 = arith.subf %9, %14 : vector<16x32xf32>
    %16 = arith.mulf %15, %15 : vector<16x32xf32>
    %cst_11 = arith.constant dense<0.000000e+00> : vector<16xf32>
    %17 = vector.multi_reduction <add>, %16, %cst_11 [1] : vector<16x32xf32> to vector<16xf32>
    %18 = vector.shape_cast %17 : vector<16xf32> to vector<16x1xf32>
    %cst_12 = arith.constant 3.200000e+01 : f32
    %19 = vector.broadcast %cst_12 : f32 to vector<16x1xf32>
    %20 = arith.divf %18, %19 : vector<16x1xf32>
    %21 = vector.broadcast %13 : vector<16x1xf32> to vector<16x32xf32>
    %22 = arith.subf %9, %21 : vector<16x32xf32>
    %cst_13 = arith.constant 9.99999974E-6 : f32
    %23 = vector.broadcast %cst_13 : f32 to vector<16x1xf32>
    %24 = arith.addf %20, %23 : vector<16x1xf32>
    %25 = math.rsqrt %24 : vector<16x1xf32>
    %26 = vector.broadcast %25 : vector<16x1xf32> to vector<16x32xf32>
    %27 = arith.mulf %22, %26 : vector<16x32xf32>
    %28 = vector.broadcast %1 : vector<1x32xf32> to vector<16x32xf32>
    %29 = arith.mulf %27, %28 : vector<16x32xf32>
    %30 = vector.broadcast %2 : vector<1x32xf32> to vector<16x32xf32>
    %31 = arith.addf %29, %30 : vector<16x32xf32>
    %c0_14 = arith.constant 0 : index
    %c0_15 = arith.constant 0 : index
    %c0_16 = arith.constant 0 : index
    %32 = vector.load %arg2[%c0_14, %c0_15, %c0_16] : memref<1x3x128xf32, #tpu.memory_space<vmem>>, vector<1x3x128xf32>
    %33 = vector.shape_cast %32 : vector<1x3x128xf32> to vector<3x128xf32>
    %34 = vector.shape_cast %33 : vector<3x128xf32> to vector<3x16x8xf32>
    %c0_17 = arith.constant 0 : index
    %c0_18 = arith.constant 0 : index
    %35 = vector.load %arg6[%c0_17, %c0_18] : memref<32x4xf32, #tpu.memory_space<vmem>>, vector<32x4xf32>
    %cst_19 = arith.constant dense<0.000000e+00> : vector<16x4xf32>
    %36 = tpu.matmul %31, %35, %cst_19 {dimension_numbers = #tpu.dot_dimension_numbers<[1], [0], [0], [1], [0, 0, 1, 1], [], []>, precision = #tpu.contract_precision<fp32>} : vector<16x32xf32>, vector<32x4xf32>, vector<16x4xf32> -> vector<16x4xf32>
    %37 = vector.extract_strided_slice %36 {offsets = [0, 0], sizes = [16, 1], strides = [1, 1]} : vector<16x4xf32> to vector<16x1xf32>
    %38 = vector.extract_strided_slice %34 {offsets = [0, 0, 0], sizes = [1, 16, 8], strides = [1, 1, 1]} : vector<3x16x8xf32> to vector<1x16x8xf32>
    %39 = vector.shape_cast %38 : vector<1x16x8xf32> to vector<16x8xf32>
    %40 = vector.broadcast %37 : vector<16x1xf32> to vector<16x8xf32>
    %41 = arith.mulf %40, %39 : vector<16x8xf32>
    %42 = vector.extract_strided_slice %36 {offsets = [0, 1], sizes = [16, 1], strides = [1, 1]} : vector<16x4xf32> to vector<16x1xf32>
    %43 = vector.extract_strided_slice %34 {offsets = [1, 0, 0], sizes = [1, 16, 8], strides = [1, 1, 1]} : vector<3x16x8xf32> to vector<1x16x8xf32>
    %44 = vector.shape_cast %43 : vector<1x16x8xf32> to vector<16x8xf32>
    %45 = vector.broadcast %42 : vector<16x1xf32> to vector<16x8xf32>
    %46 = arith.mulf %45, %44 : vector<16x8xf32>
    %47 = arith.addf %41, %46 : vector<16x8xf32>
    %48 = vector.extract_strided_slice %36 {offsets = [0, 2], sizes = [16, 1], strides = [1, 1]} : vector<16x4xf32> to vector<16x1xf32>
    %49 = vector.extract_strided_slice %34 {offsets = [2, 0, 0], sizes = [1, 16, 8], strides = [1, 1, 1]} : vector<3x16x8xf32> to vector<1x16x8xf32>
    %50 = vector.shape_cast %49 : vector<1x16x8xf32> to vector<16x8xf32>
    %51 = vector.broadcast %48 : vector<16x1xf32> to vector<16x8xf32>
    %52 = arith.mulf %51, %50 : vector<16x8xf32>
    %53 = arith.addf %47, %52 : vector<16x8xf32>
    %54 = vector.extract_strided_slice %36 {offsets = [0, 3], sizes = [16, 1], strides = [1, 1]} : vector<16x4xf32> to vector<16x1xf32>
    %55 = vector.broadcast %54 : vector<16x1xf32> to vector<16x8xf32>
    %56 = arith.addf %53, %55 : vector<16x8xf32>
    %cst_20 = arith.constant dense<0xFF800000> : vector<16xf32>
    %57 = vector.multi_reduction <maximumf>, %56, %cst_20 [1] : vector<16x8xf32> to vector<16xf32>
    %58 = vector.shape_cast %57 : vector<16xf32> to vector<16x1xf32>
    %59 = vector.broadcast %58 : vector<16x1xf32> to vector<16x8xf32>
    %60 = arith.subf %56, %59 : vector<16x8xf32>
    %61 = math.exp %60 : vector<16x8xf32>
    %cst_21 = arith.constant dense<0.000000e+00> : vector<16xf32>
    %62 = vector.multi_reduction <add>, %61, %cst_21 [1] : vector<16x8xf32> to vector<16xf32>
    %63 = vector.shape_cast %62 : vector<16xf32> to vector<16x1xf32>
    %64 = vector.broadcast %63 : vector<16x1xf32> to vector<16x8xf32>
    %65 = arith.divf %61, %64 : vector<16x8xf32>
    %66 = vector.extract_strided_slice %34 {offsets = [0, 0, 0], sizes = [1, 16, 8], strides = [1, 1, 1]} : vector<3x16x8xf32> to vector<1x16x8xf32>
    %67 = vector.shape_cast %66 : vector<1x16x8xf32> to vector<16x8xf32>
    %68 = arith.mulf %65, %67 : vector<16x8xf32>
    %cst_22 = arith.constant dense<0.000000e+00> : vector<16xf32>
    %69 = vector.multi_reduction <add>, %68, %cst_22 [1] : vector<16x8xf32> to vector<16xf32>
    %70 = vector.shape_cast %69 : vector<16xf32> to vector<16x1xf32>
    %71 = vector.extract_strided_slice %34 {offsets = [1, 0, 0], sizes = [1, 16, 8], strides = [1, 1, 1]} : vector<3x16x8xf32> to vector<1x16x8xf32>
    %72 = vector.shape_cast %71 : vector<1x16x8xf32> to vector<16x8xf32>
    %73 = arith.mulf %65, %72 : vector<16x8xf32>
    %cst_23 = arith.constant dense<0.000000e+00> : vector<16xf32>
    %74 = vector.multi_reduction <add>, %73, %cst_23 [1] : vector<16x8xf32> to vector<16xf32>
    %75 = vector.shape_cast %74 : vector<16xf32> to vector<16x1xf32>
    %76 = vector.extract_strided_slice %34 {offsets = [2, 0, 0], sizes = [1, 16, 8], strides = [1, 1, 1]} : vector<3x16x8xf32> to vector<1x16x8xf32>
    %77 = vector.shape_cast %76 : vector<1x16x8xf32> to vector<16x8xf32>
    %78 = arith.mulf %65, %77 : vector<16x8xf32>
    %cst_24 = arith.constant dense<0.000000e+00> : vector<16xf32>
    %79 = vector.multi_reduction <add>, %78, %cst_24 [1] : vector<16x8xf32> to vector<16xf32>
    %80 = vector.shape_cast %79 : vector<16xf32> to vector<16x1xf32>
    %81 = tpu.concatenate %70, %75, %80 in 1 : vector<16x1xf32>, vector<16x1xf32>, vector<16x1xf32> -> vector<16x3xf32>
    %cst_25 = arith.constant dense<0.000000e+00> : vector<16x32xf32>
    %82 = tpu.matmul %81, %4, %cst_25 {dimension_numbers = #tpu.dot_dimension_numbers<[1], [0], [0], [1], [0, 0, 1, 1], [], []>, precision = #tpu.contract_precision<fp32>} : vector<16x3xf32>, vector<3x32xf32>, vector<16x32xf32> -> vector<16x32xf32>
    %83 = arith.addf %31, %82 : vector<16x32xf32>
    %84 = vector.broadcast %3 : vector<1x32xf32> to vector<16x32xf32>
    %85 = arith.addf %83, %84 : vector<16x32xf32>
    %c0_26 = arith.constant 0 : index
    %c0_27 = arith.constant 0 : index
    %86 = vector.load %arg7[%c0_26, %c0_27] : memref<32x12xf32, #tpu.memory_space<vmem>>, vector<32x12xf32>
    %cst_28 = arith.constant dense<0.000000e+00> : vector<16x12xf32>
    %87 = tpu.matmul %85, %86, %cst_28 {dimension_numbers = #tpu.dot_dimension_numbers<[1], [0], [0], [1], [0, 0, 1, 1], [], []>, precision = #tpu.contract_precision<fp32>} : vector<16x32xf32>, vector<32x12xf32>, vector<16x12xf32> -> vector<16x12xf32>
    %c0_29 = arith.constant 0 : index
    %c0_30 = arith.constant 0 : index
    %88 = vector.load %arg8[%c0_29, %c0_30] : memref<1x12xf32, #tpu.memory_space<vmem>>, vector<1x12xf32>
    %89 = vector.broadcast %88 : vector<1x12xf32> to vector<16x12xf32>
    %90 = arith.addf %87, %89 : vector<16x12xf32>
    %91 = arith.mulf %90, %90 : vector<16x12xf32>
    %cst_31 = arith.constant dense<0.000000e+00> : vector<12xf32>
    %92 = vector.multi_reduction <add>, %91, %cst_31 [0] : vector<16x12xf32> to vector<12xf32>
    %93 = vector.shape_cast %92 : vector<12xf32> to vector<1x12xf32>
    %cst_32 = arith.constant 6.250000e-02 : f32
    %94 = vector.broadcast %cst_32 : f32 to vector<1x12xf32>
    %95 = arith.mulf %93, %94 : vector<1x12xf32>
    %96 = math.rsqrt %95 : vector<1x12xf32>
    %97 = vector.broadcast %96 : vector<1x12xf32> to vector<16x12xf32>
    %98 = arith.mulf %90, %97 : vector<16x12xf32>
    %99 = tpu.transpose %98, [1, 0] : vector<16x12xf32> -> vector<12x16xf32>
    %c0_33 = arith.constant 0 : index
    %c0_34 = arith.constant 0 : index
    %c0_35 = arith.constant 0 : index
    %100 = vector.load %arg3[%c0_33, %c0_34, %c0_35] : memref<1x4x128xf32, #tpu.memory_space<vmem>>, vector<1x4x128xf32>
    %101 = vector.shape_cast %100 : vector<1x4x128xf32> to vector<4x128xf32>
    %cst_36 = arith.constant 0.000000e+00 : f32
    %102 = vector.broadcast %cst_36 : f32 to vector<4x128xf32>
    %cst_37 = arith.constant 0.000000e+00 : f32
    %103 = vector.broadcast %cst_37 : f32 to vector<4x128xf32>
    %104 = vector.extract_strided_slice %33 {offsets = [0, 0], sizes = [1, 128], strides = [1, 1]} : vector<3x128xf32> to vector<1x128xf32>
    %105 = vector.extract_strided_slice %99 {offsets = [0, 0], sizes = [4, 16], strides = [1, 1]} : vector<12x16xf32> to vector<4x16xf32>
    %106 = vector.shape_cast %105 : vector<4x16xf32> to vector<4x16x1xf32>
    %107 = vector.shape_cast %106 : vector<4x16x1xf32> to vector<4x16x1xf32>
    %108 = vector.broadcast %107 : vector<4x16x1xf32> to vector<4x16x8xf32>
    %109 = vector.shape_cast %108 : vector<4x16x8xf32> to vector<4x128xf32>
    %110 = vector.broadcast %104 : vector<1x128xf32> to vector<4x128xf32>
    %111 = arith.mulf %109, %110 : vector<4x128xf32>
    %112 = arith.addf %102, %111 : vector<4x128xf32>
    %c0_38 = arith.constant 0 : index
    %c0_39 = arith.constant 0 : index
    %113 = vector.load %arg9[%c0_38, %c0_39] : memref<4x4xf32, #tpu.memory_space<vmem>>, vector<4x1xf32>
    %114 = vector.broadcast %113 : vector<4x1xf32> to vector<4x128xf32>
    %115 = vector.broadcast %104 : vector<1x128xf32> to vector<4x128xf32>
    %116 = arith.mulf %114, %115 : vector<4x128xf32>
    %117 = arith.addf %103, %116 : vector<4x128xf32>
    %118 = vector.extract_strided_slice %33 {offsets = [1, 0], sizes = [1, 128], strides = [1, 1]} : vector<3x128xf32> to vector<1x128xf32>
    %119 = vector.extract_strided_slice %99 {offsets = [4, 0], sizes = [4, 16], strides = [1, 1]} : vector<12x16xf32> to vector<4x16xf32>
    %120 = vector.shape_cast %119 : vector<4x16xf32> to vector<4x16x1xf32>
    %121 = vector.shape_cast %120 : vector<4x16x1xf32> to vector<4x16x1xf32>
    %122 = vector.broadcast %121 : vector<4x16x1xf32> to vector<4x16x8xf32>
    %123 = vector.shape_cast %122 : vector<4x16x8xf32> to vector<4x128xf32>
    %124 = vector.broadcast %118 : vector<1x128xf32> to vector<4x128xf32>
    %125 = arith.mulf %123, %124 : vector<4x128xf32>
    %126 = arith.addf %112, %125 : vector<4x128xf32>
    %c0_40 = arith.constant 0 : index
    %c1_41 = arith.constant 1 : index
    %127 = vector.load %arg9[%c0_40, %c1_41] : memref<4x4xf32, #tpu.memory_space<vmem>>, vector<4x1xf32>
    %128 = vector.broadcast %127 : vector<4x1xf32> to vector<4x128xf32>
    %129 = vector.broadcast %118 : vector<1x128xf32> to vector<4x128xf32>
    %130 = arith.mulf %128, %129 : vector<4x128xf32>
    %131 = arith.addf %117, %130 : vector<4x128xf32>
    %132 = vector.extract_strided_slice %33 {offsets = [2, 0], sizes = [1, 128], strides = [1, 1]} : vector<3x128xf32> to vector<1x128xf32>
    %133 = vector.extract_strided_slice %99 {offsets = [8, 0], sizes = [4, 16], strides = [1, 1]} : vector<12x16xf32> to vector<4x16xf32>
    %134 = vector.shape_cast %133 : vector<4x16xf32> to vector<4x16x1xf32>
    %135 = vector.shape_cast %134 : vector<4x16x1xf32> to vector<4x16x1xf32>
    %136 = vector.broadcast %135 : vector<4x16x1xf32> to vector<4x16x8xf32>
    %137 = vector.shape_cast %136 : vector<4x16x8xf32> to vector<4x128xf32>
    %138 = vector.broadcast %132 : vector<1x128xf32> to vector<4x128xf32>
    %139 = arith.mulf %137, %138 : vector<4x128xf32>
    %140 = arith.addf %126, %139 : vector<4x128xf32>
    %c0_42 = arith.constant 0 : index
    %c2_43 = arith.constant 2 : index
    %141 = vector.load %arg9[%c0_42, %c2_43] : memref<4x4xf32, #tpu.memory_space<vmem>>, vector<4x1xf32>
    %142 = vector.broadcast %141 : vector<4x1xf32> to vector<4x128xf32>
    %143 = vector.broadcast %132 : vector<1x128xf32> to vector<4x128xf32>
    %144 = arith.mulf %142, %143 : vector<4x128xf32>
    %145 = arith.addf %131, %144 : vector<4x128xf32>
    %c0_44 = arith.constant 0 : index
    %c3_45 = arith.constant 3 : index
    %146 = vector.load %arg9[%c0_44, %c3_45] : memref<4x4xf32, #tpu.memory_space<vmem>>, vector<4x1xf32>
    %147 = vector.broadcast %146 : vector<4x1xf32> to vector<4x128xf32>
    %148 = arith.addf %145, %147 : vector<4x128xf32>
    %149 = arith.mulf %148, %101 : vector<4x128xf32>
    %150 = arith.addf %149, %140 : vector<4x128xf32>
    %c0_46 = arith.constant 0 : index
    %c0_47 = arith.constant 0 : index
    %c0_48 = arith.constant 0 : index
    %151 = vector.load %arg10[%c0_46, %c0_47, %c0_48] : memref<1x4x128xf32, #tpu.memory_space<vmem>>, vector<1x4x128xf32>
    %152 = vector.shape_cast %151 : vector<1x4x128xf32> to vector<4x128xf32>
    %153 = vector.shape_cast %150 : vector<4x128xf32> to vector<1x4x128xf32>
    tpu.vector_store %arg10[%c0_46, %c0_47, %c0_48], %153 {strides = array<i32>} : memref<1x4x128xf32, #tpu.memory_space<vmem>>, vector<1x4x128xf32>,
    return
  }
  func.func @transform_0(%arg0: i32) -> (i32, i32) {
    %c0_i32 = arith.constant 0 : i32
    %c0_i32_0 = arith.constant 0 : i32
    return %arg0, %c0_i32 : i32, i32
  }
  func.func @transform_1(%arg0: i32) -> (i32, i32, i32) {
    %c0_i32 = arith.constant 0 : i32
    %c0_i32_0 = arith.constant 0 : i32
    %c0_i32_1 = arith.constant 0 : i32
    return %arg0, %c0_i32, %c0_i32_0 : i32, i32, i32
  }
  func.func @transform_2(%arg0: i32) -> (i32, i32, i32) {
    %c0_i32 = arith.constant 0 : i32
    %c0_i32_0 = arith.constant 0 : i32
    %c0_i32_1 = arith.constant 0 : i32
    return %arg0, %c0_i32, %c0_i32_0 : i32, i32, i32
  }
  func.func @transform_3(%arg0: i32) -> (i32, i32) {
    %c0_i32 = arith.constant 0 : i32
    %c0_i32_0 = arith.constant 0 : i32
    %c0_i32_1 = arith.constant 0 : i32
    return %c0_i32, %c0_i32_0 : i32, i32
  }
  func.func @transform_4(%arg0: i32) -> (i32, i32) {
    %c0_i32 = arith.constant 0 : i32
    %c0_i32_0 = arith.constant 0 : i32
    %c0_i32_1 = arith.constant 0 : i32
    return %c0_i32, %c0_i32_0 : i32, i32
  }
  func.func @transform_5(%arg0: i32) -> (i32, i32) {
    %c0_i32 = arith.constant 0 : i32
    %c0_i32_0 = arith.constant 0 : i32
    %c0_i32_1 = arith.constant 0 : i32
    return %c0_i32, %c0_i32_0 : i32, i32
  }
  func.func @transform_6(%arg0: i32) -> (i32, i32) {
    %c0_i32 = arith.constant 0 : i32
    %c0_i32_0 = arith.constant 0 : i32
    %c0_i32_1 = arith.constant 0 : i32
    return %c0_i32, %c0_i32_0 : i32, i32
  }
  func.func @transform_7(%arg0: i32) -> (i32, i32) {
    %c0_i32 = arith.constant 0 : i32
    %c0_i32_0 = arith.constant 0 : i32
    %c0_i32_1 = arith.constant 0 : i32
    return %c0_i32, %c0_i32_0 : i32, i32
  }
  func.func @transform_8(%arg0: i32) -> (i32, i32) {
    %c0_i32 = arith.constant 0 : i32
    %c0_i32_0 = arith.constant 0 : i32
    %c0_i32_1 = arith.constant 0 : i32
    return %c0_i32, %c0_i32_0 : i32, i32
  }
  func.func @transform_9(%arg0: i32) -> (i32, i32, i32) {
    %c0_i32 = arith.constant 0 : i32
    %c0_i32_0 = arith.constant 0 : i32
    %c0_i32_1 = arith.constant 0 : i32
    return %arg0, %c0_i32, %c0_i32_0 : i32, i32, i32
  }
}

</mosaic_0001>

<bundles_post_ra>
// kernel: tpu_custom_call.1
= control target key start
LH: loop header
LB: loop body
LE: loop exit
PB: predicated region body
PF: predicated region fallthrough
CT: control target
= control target key end

     0   :  { %s5055_s0 = inlined_call_operand.vmem [shape: f32[32,6], index: 0, kind: input, shape index: {}]   ;;  %s5056_s1 = inlined_call_operand.vmem [shape: f32[2,3,128], index: 1, kind: input, shape index: {}]   ;;  %s5057_s2 = inlined_call_operand.vmem [shape: f32[2,4,128], index: 2, kind: input, shape index: {}]   ;;  %s5058_s3 = inlined_call_operand.vmem [shape: f32[6,32], index: 3, kind: input, shape index: {}]   ;;  %s5059_s4 = inlined_call_operand.vmem [shape: f32[7,32], index: 4, kind: input, shape index: {}]   ;;  %s5060_s5 = inlined_call_operand.vmem [shape: f32[32,4], index: 5, kind: input, shape index: {}]   ;;  %s5061_s6 = inlined_call_operand.vmem [shape: f32[32,12], index: 6, kind: input, shape index: {}]   ;;  %s5062_s7 = inlined_call_operand.vmem [shape: f32[1,12], index: 7, kind: input, shape index: {}]   ;;  %s5063_s8 = inlined_call_operand.vmem [shape: f32[4,4], index: 8, kind: input, shape index: {}]   ;;  %s5064_s9 = inlined_call_operand.hbm [shape: f32[2,4,128], index: 9, kind: output, shape index: {}]  }
   0x1   :  { %5094 = sst [smem:[#allocation5_spill]] %s5055_s0 }
   0x2   :  { %5095 = sst [smem:[#allocation6_spill]] %s5056_s1 }
   0x3   :  { %5096 = sst [smem:[#allocation7_spill]] %s5058_s3 }
   0x4   :  { %5097 = sst [smem:[#allocation8_spill]] %s5059_s4 }
   0x5   :  { %14 = vsyncpa [#allocation3], 0 }
   0x6   :  { %16 = vsyncpa [#allocation3 + $0x1], 0  ;;  %s4446_s30 = smov 0   ;;  %s4448_s10 = smov 0  }
   0x7   :  { %s4450_s11 = smov 0   ;;  %s4452_s12 = smov 0  }
   0x8 LB: > { %s4467_s13 = sadd.s32 4294967295, %s4371_s12   ;;  %s3764_s14 = sadd.s32 4294967294, %s4371_s12   ;;  %s4371_s12 = sphi %s4452_s12, %s5123_s12   ;;  %s4367_s11 = sphi %s4450_s11, %s5122_s11   ;;  %s4363_s10 = sphi %s4448_s10, %s5121_s10   ;;  %s4359_s30 = sphi %s4446_s30, %s5120_s30  }
   0x9   : > { %s4471_s15 = sadd.s32 1, %s4371_s12   ;;  %s233_s16 = sadd.s32 1, %s4367_s11 }
   0xa   : > { %s230_s17 = ssub.s32 %s4371_s12, %s4471_s15  ;;  %p243_p0 = scmp.ne.s32.totalorder %s4367_s11, %s4363_s10 }
   0xb   : > { %p231_p1 = scmp.eq.s32.totalorder %s230_s17, 0  ;;  %p244_p2 = scmp.eq.s32.totalorder %s4467_s13, 1 }
   0xc   : > { %p249_p3 = scmp.ne.s32.totalorder %s4363_s10, %s4359_s30  ;;  %p250_p4 = scmp.eq.s32.totalorder %s3764_s14, 1 }
   0xd   : > { %s4482_s18 = scalar_select %p231_p1, %s4367_s11, %s233_s16  }
   0xe   : > { %p4484_p5 = por %p244_p2, %p243_p0  ;;  %p4488_p6 = por %p250_p4, %p249_p3 }
   0xf   : > { %p3767_p7 = scmp.ge.s32.totalorder %s4371_s12, 1  ;;  %p309_p8 = scmp.lt.s32.totalorder %s4371_s12, 3 }
  0x11   : > { %p310_p9 = pnand %p3767_p7, %p309_p8 }
  0x12   : > { %s5100_s3 = sld [smem:[#allocation7_spill]] (!%p310_p9)  ;;  %vm386_vm0 = vcmask (!%p310_p9), 1045504   ;;  %s3769_s23 = sshll.u32 (!%p310_p9), %s4467_s13, 1  ;;  %vm379_vm1 = vcmask (!%p310_p9), 48128   ;;  %vm879_vm2 = vcmask (!%p310_p9), 261120   ;;  %v1100_v38 = vld [vmem:[%s5060_s5] sm:$0xff] (!%p310_p9) }
  0x13   : > { %313 = sbr.rel (%p310_p9) target bundleno = 2566 (0xa06), region = 56  ;;  %p354_p10 = scmp.lt.s32.totalorder (!%p310_p9), %s3769_s23, 3  ;;  %v1101_v39 = vld [vmem:[%s5060_s5 + $0x8] sm:$0xff] (!%p310_p9)  ;;  %v1102_v40 = vld [vmem:[%s5060_s5 + $0x10] sm:$0xff] (!%p310_p9)  ;;  %v1111_v41 = vand.u32 (!%p310_p9), 4294901760, %v1100_v38  ;;  %v1103_v43 = vld [vmem:[%s5060_s5 + $0x18] sm:$0xff] (!%p310_p9) }
  0x14   : > { %s5101_s0 = sld [smem:[#allocation5_spill]] (!%p310_p9)  ;;  %s5102_s4 = sld [smem:[#allocation8_spill]] (!%p310_p9)  ;;  %v1114_v42 = vand.u32 (!%p310_p9), 4294901760, %v1101_v39  ;;  %v1117_v44 = vand.u32 (!%p310_p9), 4294901760, %v1102_v40  ;;  %v1120_v45 = vand.u32 (!%p310_p9), 4294901760, %v1103_v43  ;;  %vm1684_vm3 = vcmask (!%p310_p9), 64512  }
  0x15   : > { %v1201_v48 = vsub.f32 (!%p310_p9), %v1100_v38, %v1111_v41  ;;  %p359_p11 = scmp.lt.s32.totalorder (!%p310_p9), %s4467_s13, 1  ;;  %s5103_s1 = sld [smem:[#allocation6_spill]] (!%p310_p9)  ;;  %vm1744_vm4 = vcmask (!%p310_p9), 1042432   ;;  %vm1731_vm5 = vcmask (!%p310_p9), 7168   ;;  %vm1734_vm6 = vcmask (!%p310_p9), 15360  }
  0x16   : > { %v4528_v46 = vpack.c.bf16 (!%p310_p9), %v1114_v42, %v1111_v41  ;;  %v4530_v47 = vpack.c.bf16 (!%p310_p9), %v1120_v45, %v1117_v44  ;;  %v1208_v49 = vsub.f32 (!%p310_p9), %v1101_v39, %v1114_v42  ;;  %v1215_v54 = vsub.f32 (!%p310_p9), %v1102_v40, %v1117_v44  ;;  %s5082_s16 = smov (!%p310_p9), 112   ;;  %s5066_s17 = smov (!%p310_p9), 120  }
  0x17   : > { %v1202_v50 = vand.u32 (!%p310_p9), 4294901760, %v1201_v48  ;;  %v1222_v55 = vsub.f32 (!%p310_p9), %v1103_v43, %v1120_v45  ;;  %s5068_s21 = smov (!%p310_p9), 104   ;;  %s5070_s22 = smov (!%p310_p9), 88   ;;  %v4390_v39 = vmov (!%p310_p9), 2   ;;  %v4391_v40 = vmov (!%p310_p9), 3  }
  0x18   : > { %v374_v0 = vld [vmem:[%s5100_s3] sm:$0x3f] (!%p310_p9)  ;;  %4083 = vmatprep.subr.bf16.mxu1 (!%p310_p9), %v4528_v46  ;;  %v1209_v51 = vand.u32 (!%p310_p9), 4294901760, %v1208_v49  ;;  %v1216_v58 = vand.u32 (!%p310_p9), 4294901760, %v1215_v54  ;;  %s5086_s25 = smov (!%p310_p9), 80   ;;  %s5072_s28 = smov (!%p310_p9), 56  }
  0x19   : > { %v388_v1 = vsel (!%p310_p9), %vm386_vm0, %v374_v0, 0  ;;  %4085 = vmatpush3.bf16.msra.mxu1 (!%p310_p9), %v4528_v46  ;;  %v1203_v52 = vsub.f32 (!%p310_p9), %v1201_v48, %v1202_v50  ;;  %v1223_v59 = vand.u32 (!%p310_p9), 4294901760, %v1222_v55  ;;  %s5088_s29 = smov (!%p310_p9), 64   ;;  %vm1737_vm7 = vcmask (!%p310_p9), 23552   ;;  %s5116_s3 = smov (!%p310_p9), 16  }
  0x1a   : > { %v391_v2 = vand.u32 4294901760, %v388_v1  ;;  %s5125_s23 = smov (!%p354_p10, %s3769_s23), 3  ;;  %v3773_v21 = vld [vmem:[%s5102_s4] ss:$0 sm:$0xff]  ;;  %4087 = vmatprep.subr.bf16.mxu1 %v4530_v47  ;;  %v1210_v53 = vsub.f32 %v1208_v49, %v1209_v51  ;;  %v1217_v61 = vsub.f32 %v1215_v54, %v1216_v58  ;;  %vm2792_vm8 = vcmask 97280  }
  0x1b   : > { %s3770_s24 = sshll.u32 %s5125_s23, 3  ;;  %v1204_v56 = vand.u32 4294901760, %v1203_v52  ;;  %v1224_v62 = vsub.f32 %v1222_v55, %v1223_v59  ;;  %s5084_s23 = smov 96   ;;  %v4392_v52 = vmov 1983009808   ;;  %vm3080_vm9 = vcmask 130048  }
  0x1c   : > { %3890 = vmatprep.subr.mxu0 %v391_v2  ;;  %v478_v3 = vsub.f32 %v388_v1, %v391_v2  ;;  %s357_s27 = scalar_lea.vmem %s5101_s0, %s3770_s24  ;;  %v1211_v57 = vand.u32 4294901760, %v1210_v53  ;;  %v1218_v63 = vand.u32 4294901760, %v1217_v61  ;;  %s5074_s24 = smov 72   ;;  %v968_v53 = vunpack.c.l.s4 %v4392_v52 }
  0x1d   : > { %3891 = vmatpush3.msra.mxu0 %v391_v2  ;;  %v372_v5 = vld [vmem:[%s357_s27] sm:$0xff]  ;;  %v373_v6 = vld [vmem:[%s357_s27 + $0x8] sm:$0xff]  ;;  %4089 = vmatpush3.bf16.msra.mxu1 %v4530_v47  ;;  %v1225_v0 = vand.u32 4294901760, %v1224_v62  ;;  %s4552_s26 = scalar_select %p359_p11, %s4467_s13, 1  ;;  %v4393_v62 = vmov 1934713408  }
  0x1e   : > { %v479_v4 = vand.u32 4294901760, %v478_v3  ;;  %v381_v7 = vsel %vm379_vm1, %v372_v5, 0  ;;  %v384_v8 = vsel %vm379_vm1, %v373_v6, 0  ;;  %v4536_v60 = vpack.c.bf16 %v1211_v57, %v1204_v56  ;;  %s5114_s0 = smov 88  }
  0x1f   : > { %v456_v10 = vand.u32 4294901760, %v381_v7  ;;  %v466_v11 = vand.u32 4294901760, %v384_v8  ;;  %v4539_v1 = vpack.c.bf16 %v1225_v0, %v1218_v63  ;;  %v4547_v5 = vpack.c.bf16 %v1223_v59, %v1216_v58  ;;  %s5065_s27 = sshll.u32 %s4552_s26, 2 }
  0x20   : > { %v480_v9 = vsub.f32 %v478_v3, %v479_v4  ;;  %4091 = vmatprep.subr.bf16.mxu1 %v4536_v60  ;;  %v4373_v6 = vmov 0   ;;  %s4560_s14 = scalar_lea.vmem %s5103_s1, %s5065_s27  ;;  %s5076_s27 = smov 40   ;;  %v969_v57 = vunpack.c.0.s8 %v968_v53  ;;  %v1001_v63 = vunpack.c.l.s4 %v4393_v62 }
  0x21   : > { %v457_v13 = vsub.f32 %v381_v7, %v456_v10  ;;  %v467_v14 = vsub.f32 %v384_v8, %v466_v11  ;;  %4283 = vset.pattern.permute.xlu1 %v4373_v6  ;;  %v4563_v7 = vld [vmem:[%s4560_s14] sm:$0x7]  ;;  %s5115_s1 = smov 104   ;;  %vm3082_vm10 = vcmask 195584   ;;  %vm3085_vm11 = vcmask 326656  }
  0x22   : > { %v481_v12 = vand.u32 4294901760, %v480_v9  ;;  %vm3087_vm12 = vcmask 392192   ;;  %vm3089_vm13 = vcmask 457728   ;;  %vm3091_vm14 = vcmask 523264  }
  0x23   : > { %v458_v15 = vand.u32 4294901760, %v457_v13  ;;  %v468_v16 = vand.u32 4294901760, %v467_v14  ;;  %vm3093_vm15 = vcmask 588800   ;;  %vm3095_vm0 = vcmask 654336  }
  0x24   : > { %3895 = vmatprep.subr.mxu0 %v481_v12  ;;  %vm3097_vm1 = vcmask 719872  }
  0x25   : > { %v459_v17 = vsub.f32 %v457_v13, %v458_v15  ;;  %v469_v18 = vsub.f32 %v467_v14, %v468_v16 }
  0x27   : > { %v460_v19 = vand.u32 4294901760, %v459_v17  ;;  %v470_v20 = vand.u32 4294901760, %v469_v18  ;;  %v3775_v17 = vld [vmem:[%s5102_s4 + $0x2] ss:$0 sm:$0xff] }
  0x29   : > { %3892 = vmatprep.mubr.f32.mxu0 %v460_v19 }
  0x2a   : > { %3893 = vmatmul.mubr.f32.vlgmr.msra.gmra.mrb[0].mxu0 %v470_v20 }
  0x2b   : > { %3896 = vmatpush3.msra.mxu0 %v481_v12  ;;  %3897 = vmatprep.mubr.f32.mxu0 %v456_v10 }
  0x2c   : > { %3900 = vmatprep.subr.mxu0 %v478_v3 }
  0x32   : > { %3898 = vmatmul.mubr.f32.vlgmr.msra.gmra.mrb[0].mxu0 %v466_v11 }
  0x33   : > { %3901 = vmatpush3.msra.mxu0 %v478_v3  ;;  %3902 = vmatprep.mubr.f32.mxu0 %v457_v13  ;;  %v4543_v3 = vpack.c.bf16 %v1222_v55, %v1215_v54  ;;  %v970_v54 = vlaneseq }
  0x34   : > { %3905 = vmatprep.subr.mxu0 %v391_v2 }
  0x35   : > { %v4636_v58 = vshrl.u32 %v970_v54, 7 }
  0x37   : > { %v4640_v0 = vsub.s32 %v969_v57, %v4636_v58 }
  0x3a   : > { %3903 = vmatmul.mubr.f32.vlgmr.msra.gmra.mrb[0].mxu0 %v467_v14 }
  0x3b   : > { %3906 = vmatpush3.msra.mxu0 %v391_v2  ;;  %3907 = vmatprep.mubr.f32.mxu0 %v458_v15  ;;  %v3774_v15 = vld [vmem:[%s5102_s4 + $0x1] ss:$0 sm:$0xff] }
  0x3c   : > { %3910 = vmatprep.subr.mxu0 %v479_v4 }
  0x42   : > { %3908 = vmatmul.mubr.f32.vlgmr.msra.gmra.mrb[0].mxu0 %v468_v16 }
  0x43   : > { %3911 = vmatpush3.msra.mxu0 %v479_v4  ;;  %3912 = vmatprep.mubr.f32.mxu0 %v456_v10  ;;  %v4545_v4 = vpack.c.bf16 %v1209_v51, %v1202_v50 }
  0x44   : > { %3915 = vmatprep.subr.mxu0 %v391_v2 }
  0x4a   : > { %3913 = vmatmul.mubr.f32.vlgmr.msra.gmra.mrb[0].mxu0 %v466_v11 }
  0x4b   : > { %3916 = vmatpush3.msra.mxu0 %v391_v2  ;;  %3917 = vmatprep.mubr.f32.mxu0 %v456_v10  ;;  %v4541_v2 = vpack.c.bf16 %v1208_v49, %v1201_v48 }
  0x52   : > { %3918 = vmatmul.mubr.f32.vlgmr.msra.gmra.mrb[0].mxu0 %v466_v11 }
 0x125   : > { %v3919_v22 = vpop.f32.mrb[0].mxu0 }
 0x126   : > { %v869_v23 = vpop.f32.mrb[1].mxu0  ;;  %v4178_v25 = vadd.f32 %v3919_v22, %v3773_v21 }
 0x127   : > { %v4179_v24 = vadd.f32 %v3773_v21, %v869_v23 }
 0x128   : > { %v883_v27 = vsel %vm879_vm2, %v4178_v25, 0.0 }
 0x129   : > { %v880_v26 = vsel %vm879_vm2, %v4179_v24, 0.0 }
 0x12a   : > { %881 = vadd.xlane.f32.xlu0 %v880_v26 }
 0x12e   : > { %884 = vadd.xlane.f32.xlu0 %v883_v27 }
 0x144   : > { %921 = vrot.lane.b32.xlu0 %v4563_v7, %s5066_s17  ;;  %s5090_s17 = smov 48  }
 0x148   : > { %933 = vrot.lane.b32.xlu0 %v4563_v7, %s5070_s22  ;;  %s5092_s22 = smov 32  }
 0x14c   : > { %939 = vrot.lane.b32.xlu0 %v4563_v7, %s5074_s24  ;;  %s5093_s24 = smov 16  }
 0x150   : > { %945 = vrot.lane.b32.xlu0 %v4563_v7, %s5072_s28  ;;  %s5080_s28 = smov 8  }
 0x154   : > { %951 = vrot.lane.b32.xlu0 %v4563_v7, %s5076_s27  ;;  %s5104_s27 = smov 48  }
 0x1b7   : > { %v882_v28 = vpop.xlane.xlu0 %881 }
 0x1b8   : > { %v887_v29 = vmul.f32 0.03125, %v882_v28 }
 0x1ba   : > { %v4506_v30 = vsub.f32 %v4179_v24, %v887_v29 }
 0x1bb   : > { %v885_v31 = vpop.xlane.xlu0 %884 }
 0x1bc   : > { %v888_v32 = vmul.f32 0.03125, %v885_v31  ;;  %v891_v33 = vmul.f32 %v4506_v30, %v4506_v30 }
 0x1be   : > { %v4510_v34 = vsub.f32 %v4178_v25, %v888_v32  ;;  %v893_v35 = vsel %vm879_vm2, %v891_v33, 0.0 }
 0x1bf   : > { %894 = vadd.xlane.f32.xlu1 %v893_v35  ;;  %v922_v43 = vpop.permute.xlu0 %921 }
 0x1c0   : > { %v892_v36 = vmul.f32 %v4510_v34, %v4510_v34 }
 0x1c2   : > { %v896_v37 = vsel %vm879_vm2, %v892_v36, 0.0  ;;  %v4389_v36 = vmov 1  }
 0x1c3   : > { %897 = vadd.xlane.f32.xlu1 %v896_v37  ;;  %4287 = vset.pattern.permute.xlu0 %v4389_v36  ;;  %v934_v45 = vpop.permute.xlu0 %933 }
 0x1d4   : > { %924 = vrot.lane.b32.xlu1 %v4563_v7, %s5082_s16  ;;  %s5105_s16 = smov 64  }
 0x1d8   : > { %927 = vrot.lane.b32.xlu1 %v4563_v7, %s5068_s21  ;;  %s5078_s21 = smov 24  }
 0x1d9   : > { %957 = vrot.lane.b32.xlu0 %v4563_v7, %s5078_s21  ;;  %s5106_s21 = smov 80  }
 0x1dc   : > { %930 = vrot.lane.b32.xlu1 %v4563_v7, %s5084_s23  ;;  %s5109_s23 = smov 8  }
 0x1dd   : > { %963 = vrot.lane.b32.xlu0 %v4563_v7, %s5080_s28  ;;  %s5107_s28 = smov 96  }
 0x1e0   : > { %936 = vrot.lane.b32.xlu1 %v4563_v7, %s5086_s25  ;;  %s5110_s25 = smov 24  }
 0x1e4   : > { %942 = vrot.lane.b32.xlu1 %v4563_v7, %s5088_s29  ;;  %s5111_s29 = smov 40  }
 0x1e8   : > { %948 = vrot.lane.b32.xlu1 %v4563_v7, %s5090_s17  ;;  %s5108_s17 = smov 112  }
 0x1ec   : > { %954 = vrot.lane.b32.xlu1 %v4563_v7, %s5092_s22 }
 0x1f0   : > { %960 = vrot.lane.b32.xlu1 %v4563_v7, %s5093_s24 }
 0x24c   : > { %v895_v8 = vpop.xlane.xlu1 %894 }
 0x24d   : > { %v899_v9 = vmul.f32 0.03125, %v895_v8 }
 0x24f   : > { %v901_v10 = vadd.f32 1e-05, %v899_v9  ;;  %v1002_v9 = vunpack.c.0.s8 %v1001_v63 }
 0x250   : > { %v898_v11 = vpop.xlane.xlu1 %897 }
 0x251   : > { %4294 = vrsqrt.f32 %v901_v10  ;;  %v900_v12 = vmul.f32 0.03125, %v898_v11 }
 0x253   : > { %v902_v13 = vadd.f32 1e-05, %v900_v12 }
 0x254   : > { %v925_v41 = vpop.permute.xlu1 %924 }
 0x255   : > { %4296 = vrsqrt.f32 %v902_v13  ;;  %v966_v61 = vcombine.low %v4563_v7, %v925_v41 }
 0x257   : > { %v973_v10 = vrot.slane %v966_v61, %v4640_v0 }
 0x258   : > { %v928_v42 = vpop.permute.xlu1 %927 }
 0x25b   : > { %v4295_v14 = vpop.eup %4294 }
 0x25c   : > { %v905_v16 = vmul.f32 %v4295_v14, %v4506_v30  ;;  %v931_v44 = vpop.permute.xlu1 %930 }
 0x25e   : > { %v911_v18 = vmul.f32 %v3774_v15, %v905_v16 }
 0x25f   : > { %v4297_v19 = vpop.eup %4296 }
 0x260   : > { %v906_v20 = vmul.f32 %v4297_v19, %v4510_v34  ;;  %v4603_v21 = vadd.f32 %v3775_v17, %v911_v18 }
 0x262   : > { %v912_v22 = vmul.f32 %v3774_v15, %v906_v20  ;;  %v1105_v23 = vsel %vm879_vm2, %v4603_v21, 0 }
 0x263   : > { %v1179_v24 = vand.u32 4294901760, %v1105_v23 }
 0x264   : > { %v4607_v25 = vadd.f32 %v3775_v17, %v912_v22  ;;  %v4651_v22 = vsub.s32 %v1002_v9, %v4636_v58 }
 0x265   : > { %v1180_v26 = vsub.f32 %v1105_v23, %v1179_v24 }
 0x266   : > { %v1108_v27 = vsel %vm879_vm2, %v4607_v25, 0 }
 0x267   : > { %v1181_v28 = vand.u32 4294901760, %v1180_v26  ;;  %v1189_v29 = vand.u32 4294901760, %v1108_v27 }
 0x269   : > { %v1182_v30 = vsub.f32 %v1180_v26, %v1181_v28  ;;  %v1190_v31 = vsub.f32 %v1108_v27, %v1189_v29 }
 0x26b   : > { %v1183_v32 = vand.u32 4294901760, %v1182_v30  ;;  %v1191_v33 = vand.u32 4294901760, %v1190_v31 }
 0x26d   : > { %3928 = vmatprep.mubr.f32.mxu1 %v1183_v32  ;;  %v1192_v34 = vsub.f32 %v1190_v31, %v1191_v33 }
 0x26f   : > { %v1193_v35 = vand.u32 4294901760, %v1192_v34 }
 0x271   : > { %3929 = vmatmul.mubr.f32.vlgmr.msra.gmra.mrb[0].mxu1 %v1193_v35 }
 0x272   : > { %4093 = vmatpush3.bf16.msra.mxu1 %v4536_v60  ;;  %3939 = vmatprep.mubr.f32.mxu1 %v1179_v24 }
 0x273   : > { %4095 = vmatprep.subr.bf16.mxu1 %v4539_v1 }
 0x276   : > { %4097 = vmatpush3.bf16.msra.mxu1 %v4539_v1  ;;  %v974_v1 = vcombine.low %v922_v43, %v928_v42 }
 0x277   : > { %4099 = vmatprep.subr.bf16.mxu1 %v4541_v2 }
 0x278   : > { %v981_v11 = vrot.slane %v974_v1, %v4640_v0 }
 0x279   : > { %3940 = vmatmul.mubr.f32.vlgmr.msra.gmra.mrb[0].mxu1 %v1189_v29 }
 0x27a   : > { %4101 = vmatpush3.bf16.msra.mxu1 %v4541_v2  ;;  %3950 = vmatprep.mubr.f32.mxu1 %v1180_v26  ;;  %v998_v19 = vcombine.low %v973_v10, %v981_v11 }
 0x27b   : > { %4103 = vmatprep.subr.bf16.mxu1 %v4543_v3 }
 0x27c   : > { %v1006_v26 = vrot.slane %v998_v19, %v4651_v22 }
 0x27e   : > { %4105 = vmatpush3.bf16.msra.mxu1 %v4543_v3 }
 0x27f   : > { %4107 = vmatprep.subr.bf16.mxu1 %v4528_v46 }
 0x281   : > { %3951 = vmatmul.mubr.f32.vlgmr.msra.gmra.mrb[0].mxu1 %v1190_v31 }
 0x282   : > { %4109 = vmatpush3.bf16.msra.mxu1 %v4528_v46  ;;  %3961 = vmatprep.mubr.f32.mxu1 %v1181_v28 }
 0x283   : > { %4111 = vmatprep.subr.bf16.mxu1 %v4530_v47 }
 0x286   : > { %4113 = vmatpush3.bf16.msra.mxu1 %v4530_v47 }
 0x287   : > { %4115 = vmatprep.subr.bf16.mxu1 %v4545_v4 }
 0x289   : > { %3962 = vmatmul.mubr.f32.vlgmr.msra.gmra.mrb[0].mxu1 %v1191_v33  ;;  %v999_v33 = vcombine.high %v973_v10, %v981_v11 }
 0x28a   : > { %4117 = vmatpush3.bf16.msra.mxu1 %v4545_v4  ;;  %3972 = vmatprep.mubr.f32.mxu1 %v1179_v24 }
 0x28b   : > { %4119 = vmatprep.subr.bf16.mxu1 %v4547_v5 }
 0x28e   : > { %4121 = vmatpush3.bf16.msra.mxu1 %v4547_v5 }
 0x28f   : > { %4123 = vmatprep.subr.bf16.mxu1 %v4528_v46 }
 0x291   : > { %3973 = vmatmul.mubr.f32.vlgmr.msra.gmra.mrb[0].mxu1 %v1189_v29 }
 0x292   : > { %4125 = vmatpush3.bf16.msra.mxu1 %v4528_v46  ;;  %3983 = vmatprep.mubr.f32.mxu1 %v1179_v24  ;;  %v937_v46 = vpop.permute.xlu1 %936 }
 0x293   : > { %4127 = vmatprep.subr.bf16.mxu1 %v4530_v47  ;;  %v982_v2 = vcombine.low %v931_v44, %v937_v46  ;;  %v1013_v44 = vrot.slane %v999_v33, %v4651_v22 }
 0x295   : > { %v989_v12 = vrot.slane %v982_v2, %v4640_v0 }
 0x296   : > { %4129 = vmatpush3.bf16.msra.mxu1 %v4530_v47  ;;  %v940_v47 = vpop.permute.xlu0 %939  ;;  %v943_v48 = vpop.permute.xlu1 %942 }
 0x297   : > { %v990_v3 = vcombine.low %v934_v45, %v940_v47 }
 0x299   : > { %3984 = vmatmul.mubr.f32.vlgmr.msra.gmra.mrb[0].mxu1 %v1189_v29  ;;  %v997_v13 = vrot.slane %v990_v3, %v4640_v0 }
 0x29a   : > { %v946_v49 = vpop.permute.xlu0 %945  ;;  %v949_v50 = vpop.permute.xlu1 %948 }
 0x29b   : > { %v1033_v4 = vcombine.low %v943_v48, %v949_v50  ;;  %v1014_v20 = vcombine.low %v989_v12, %v997_v13  ;;  %v1015_v34 = vcombine.high %v989_v12, %v997_v13 }
 0x29d   : > { %v1040_v14 = vrot.slane %v1033_v4, %v4640_v0  ;;  %v1022_v27 = vrot.slane %v1014_v20, %v4651_v22  ;;  %v1029_v45 = vrot.slane %v1015_v34, %v4651_v22 }
 0x29e   : > { %v952_v51 = vpop.permute.xlu0 %951  ;;  %v955_v55 = vpop.permute.xlu1 %954 }
 0x29f   : > { %v1041_v5 = vcombine.low %v946_v49, %v952_v51  ;;  %v1031_v43 = vcombine.high %v1006_v26, %v1022_v27  ;;  %v1032_v53 = vcombine.low %v1013_v44, %v1029_v45 }
 0x2a1   : > { %v1048_v15 = vrot.slane %v1041_v5, %v4640_v0 }
 0x2a2   : > { %v958_v56 = vpop.permute.xlu0 %957  ;;  %v961_v59 = vpop.permute.xlu1 %960 }
 0x2a3   : > { %v1065_v23 = vcombine.low %v1040_v14, %v1048_v15  ;;  %v1066_v29 = vcombine.high %v1040_v14, %v1048_v15 }
 0x2a5   : > { %v1073_v31 = vrot.slane %v1065_v23, %v4651_v22  ;;  %v1080_v41 = vrot.slane %v1066_v29, %v4651_v22 }
 0x2a6   : > { %v964_v60 = vpop.permute.xlu0 %963 }
 0x2a7   : > { %v1057_v8 = vcombine.low %v958_v56, %v964_v60 }
 0x2a9   : > { %v1064_v17 = vrot.slane %v1057_v8, %v4640_v0 }
 0x36c   : > { %v3985_v37 = vpop.f32.mrb[0].mxu1 }
 0x36d   : > { %1645 = vperm.xlu1 %4283, %v3985_v37   ;;  %v1628_v38 = vpop.f32.mrb[1].mxu1 }
 0x36e   : > { %1651 = vperm.xlu0 %4287, %v1628_v38  }
 0x371   : > { %4284 = vset.pattern.permute.xlu1 %v4389_v36 }
 0x372   : > { %1655 = vperm.xlu1 %4284, %v3985_v37   ;;  %4288 = vset.pattern.permute.xlu0 %v4390_v39 }
 0x373   : > { %1663 = vperm.xlu0 %4288, %v1628_v38  }
 0x376   : > { %4285 = vset.pattern.permute.xlu1 %v4373_v6 }
 0x377   : > { %4290 = vset.pattern.permute.xlu0 %v4391_v40  ;;  %1640 = vperm.xlu1 %4285, %v1628_v38  }
 0x378   : > { %1679 = vperm.xlu0 %4290, %v3985_v37  }
 0x37b   : > { %4286 = vset.pattern.permute.xlu1 %v4390_v39 }
 0x37c   : > { %1667 = vperm.xlu1 %4286, %v3985_v37   ;;  %v1030_v37 = vcombine.low %v1006_v26, %v1022_v27 }
 0x380   : > { %4289 = vset.pattern.permute.xlu1 %v4391_v40 }
 0x381   : > { %1675 = vperm.xlu1 %4289, %v1628_v38  }
 0x385   : > { %4291 = vset.pattern.permute.xlu1 %v4373_v6  ;;  %v1049_v6 = vcombine.low %v955_v55, %v961_v59 }
 0x387   : > { %v1056_v16 = vrot.slane %v1049_v6, %v4640_v0 }
 0x389   : > { %v1081_v24 = vcombine.low %v1056_v16, %v1064_v17  ;;  %v1082_v30 = vcombine.high %v1056_v16, %v1064_v17 }
 0x38b   : > { %v1089_v32 = vrot.slane %v1081_v24, %v4651_v22  ;;  %v1096_v42 = vrot.slane %v1082_v30, %v4651_v22 }
 0x38d   : > { %v1098_v38 = vcombine.high %v1073_v31, %v1089_v32  ;;  %v1097_v47 = vcombine.low %v1073_v31, %v1089_v32  ;;  %v1099_v52 = vcombine.low %v1080_v41, %v1096_v42  ;;  %v3651_v41 = vld [vmem:[%s5063_s8] sm:$0xf]  ;;  %v371_v42 = vld [vmem:[%s5102_s4 + $0x4] sm:$0x7] }
 0x3ec   : > { %v1646_v18 = vpop.permute.xlu1 %1645 }
 0x3ed   : > { %v1652_v35 = vpop.permute.xlu0 %1651  ;;  %v1649_v51 = vmul.f32 %v1646_v18, %v1097_v47 }
 0x3ee   : > { %v1658_v49 = vmul.f32 %v1652_v35, %v1031_v43 }
 0x3f1   : > { %v1656_v28 = vpop.permute.xlu1 %1655 }
 0x3f2   : > { %v1659_v48 = vmul.f32 %v1656_v28, %v1098_v38  ;;  %v1664_v50 = vpop.permute.xlu0 %1663 }
 0x3f3   : > { %v1670_v59 = vmul.f32 %v1664_v50, %v1032_v53 }
 0x3f4   : > { %v1661_v56 = vadd.f32 %v1659_v48, %v1649_v51 }
 0x3f6   : > { %v1641_v40 = vpop.permute.xlu1 %1640 }
 0x3f7   : > { %v1648_v46 = vmul.f32 %v1641_v40, %v1030_v37  ;;  %v1680_v61 = vpop.permute.xlu0 %1679  ;;  %v3382_v40 = vld [vmem:[%s5063_s8] sm:$0xf] }
 0x3f9   : > { %v1660_v54 = vadd.f32 %v1658_v49, %v1648_v46 }
 0x3fb   : > { %v1668_v55 = vpop.permute.xlu1 %1667  ;;  %v1672_v62 = vadd.f32 %v1670_v59, %v1660_v54  ;;  %v4689_v59 = vsub.s32 1, %v4636_v58 }
 0x3fc   : > { %v1671_v57 = vmul.f32 %v1668_v55, %v1099_v52 }
 0x3fe   : > { %v1673_v60 = vadd.f32 %v1671_v57, %v1661_v56 }
 0x400   : > { %v1676_v63 = vpop.permute.xlu1 %1675  ;;  %v1683_v1 = vadd.f32 %v1680_v61, %v1673_v60 }
 0x401   : > { %v1682_v2 = vadd.f32 %v1676_v63, %v1672_v62 }
 0x402   : > { %v1688_v3 = vsel %vm1684_vm3, %v1683_v1, -inf }
 0x403   : > { %1689 = vmax.xlane.f32.xlu0 %v1688_v3  ;;  %v1685_v4 = vsel %vm1684_vm3, %v1682_v2, -inf }
 0x404   : > { %1686 = vmax.xlane.f32.xlu1 %v1685_v4 }
 0x490   : > { %v1690_v5 = vpop.xlane.xlu0 %1689 }
 0x491   : > { %v1692_v6 = vsub.f32 %v1683_v1, %v1690_v5  ;;  %v1687_v8 = vpop.xlane.xlu1 %1686  ;;  %v4697_v5 = vrot.slane %v4563_v7, %v4689_v59 }
 0x492   : > { %v1691_v9 = vsub.f32 %v1682_v2, %v1687_v8 }
 0x493   : > { %v1695_v10 = vmul.f32 1.442695, %v1692_v6 }
 0x494   : > { %v1693_v11 = vmul.f32 1.442695, %v1691_v9 }
 0x495   : > { %4298 = vpow2.f32 %v1695_v10 }
 0x496   : > { %4300 = vpow2.f32 %v1693_v11 }
 0x49f   : > { %v4299_v12 = vpop.eup %4298 }
 0x4a0   : > { %v4301_v13 = vpop.eup %4300  ;;  %v1700_v14 = vsel %vm1684_vm3, %v4299_v12, 0.0 }
 0x4a1   : > { %1701 = vadd.xlane.f32.xlu1 %v1700_v14  ;;  %v1697_v15 = vsel %vm1684_vm3, %v4301_v13, 0.0 }
 0x4a2   : > { %1698 = vadd.xlane.f32.xlu0 %v1697_v15 }
 0x52e   : > { %v1702_v16 = vpop.xlane.xlu1 %1701 }
 0x52f   : > { %4302 = vrcp.f32 %v1702_v16  ;;  %v1699_v17 = vpop.xlane.xlu0 %1698 }
 0x530   : > { %4304 = vrcp.f32 %v1699_v17  ;;  %v2246_v17 = vld [vmem:[%s5061_s6 + $0x8] sm:$0xff] }
 0x539   : > { %v4303_v18 = vpop.eup %4302 }
 0x53a   : > { %v4305_v19 = vpop.eup %4304  ;;  %v1706_v20 = vmul.f32 %v4303_v18, %v4299_v12 }
 0x53b   : > { %v1704_v23 = vmul.f32 %v4305_v19, %v4301_v13  ;;  %v2266_v19 = vand.u32 4294901760, %v2246_v17 }
 0x53c   : > { %v1716_v24 = vmul.f32 %v1706_v20, %v1098_v38  ;;  %v1708_v26 = vmul.f32 %v1706_v20, %v1097_v47  ;;  %v1724_v33 = vmul.f32 %v1706_v20, %v1099_v52  ;;  %v4686_v52 = vsub.s32 0, %v4636_v58 }
 0x53d   : > { %v1715_v29 = vmul.f32 %v1704_v23, %v1031_v43  ;;  %v1707_v30 = vmul.f32 %v1704_v23, %v1030_v37  ;;  %v1723_v34 = vmul.f32 %v1704_v23, %v1032_v53  ;;  %v3113_v37 = vld [vmem:[%s5063_s8] sm:$0xf]  ;;  %v1746_v43 = vsel %vm1744_vm4, %v371_v42, 0  ;;  %v2247_v23 = vld [vmem:[%s5061_s6 + $0x10] sm:$0xff] }
 0x53e   : > { %v1720_v27 = vsel %vm1684_vm3, %v1716_v24, 0.0  ;;  %v1712_v28 = vsel %vm1684_vm3, %v1708_v26, 0.0  ;;  %v1728_v35 = vsel %vm1684_vm3, %v1724_v33, 0.0  ;;  %v1749_v44 = vand.u32 4294901760, %v1746_v43  ;;  %v2248_v24 = vld [vmem:[%s5061_s6 + $0x18] sm:$0xff] }
 0x53f   : > { %1721 = vadd.xlane.f32.xlu1 %v1720_v27  ;;  %1713 = vadd.xlane.f32.xlu0 %v1712_v28  ;;  %v1717_v31 = vsel %vm1684_vm3, %v1715_v29, 0.0  ;;  %v1709_v32 = vsel %vm1684_vm3, %v1707_v30, 0.0  ;;  %v1725_v38 = vsel %vm1684_vm3, %v1723_v34, 0.0  ;;  %v4693_v1 = vrot.slane %v4563_v7, %v4686_v52  ;;  %v2245_v7 = vld [vmem:[%s5061_s6] sm:$0xff] }
 0x540   : > { %3986 = vmatprep.subr.mxu0 %v1749_v44  ;;  %v1836_v45 = vsub.f32 %v1746_v43, %v1749_v44  ;;  %v2263_v18 = vand.u32 4294901760, %v2245_v7  ;;  %v2269_v26 = vand.u32 4294901760, %v2247_v23  ;;  %v2272_v27 = vand.u32 4294901760, %v2248_v24 }
 0x541   : > { %3987 = vmatpush3.msra.mxu0 %v1749_v44  ;;  %v2360_v30 = vsub.f32 %v2246_v17, %v2266_v19  ;;  %vm3099_vm4 = vcmask 785408  }
 0x542   : > { %v1837_v46 = vand.u32 4294901760, %v1836_v45  ;;  %v4709_v20 = vpack.c.bf16 %v2266_v19, %v2263_v18  ;;  %v4721_v28 = vpack.c.bf16 %v2272_v27, %v2269_v26  ;;  %v2353_v29 = vsub.f32 %v2245_v7, %v2263_v18 }
 0x543   : > { %1718 = vadd.xlane.f32.xlu1 %v1717_v31  ;;  %1710 = vadd.xlane.f32.xlu0 %v1709_v32  ;;  %v2361_v32 = vand.u32 4294901760, %v2360_v30 }
 0x544   : > { %v1838_v47 = vsub.f32 %v1836_v45, %v1837_v46  ;;  %4131 = vmatprep.subr.bf16.mxu1 %v4709_v20  ;;  %v2354_v31 = vand.u32 4294901760, %v2353_v29 }
 0x545   : > { %4133 = vmatpush3.bf16.msra.mxu1 %v4709_v20 }
 0x546   : > { %v1839_v48 = vand.u32 4294901760, %v1838_v47  ;;  %4135 = vmatprep.subr.bf16.mxu1 %v4721_v28  ;;  %v4162_v33 = vpack.c.bf16 %v2361_v32, %v2354_v31  ;;  %v2355_v34 = vsub.f32 %v2353_v29, %v2354_v31 }
 0x547   : > { %1729 = vadd.xlane.f32.xlu1 %v1728_v35  ;;  %1726 = vadd.xlane.f32.xlu0 %v1725_v38  ;;  %v2362_v35 = vsub.f32 %v2360_v30, %v2361_v32  ;;  %v2367_v38 = vsub.f32 %v2247_v23, %v2269_v26 }
 0x548   : > { %3991 = vmatprep.subr.mxu0 %v1839_v48 }
 0x549   : > { %4137 = vmatpush3.bf16.msra.mxu1 %v4721_v28  ;;  %v2368_v42 = vand.u32 4294901760, %v2367_v38 }
 0x558   : > { %3116 = vperm.xlu1 %4291, %v3113_v37   ;;  %v2374_v37 = vsub.f32 %v2248_v24, %v2272_v27 }
 0x55a   : > { %v2375_v43 = vand.u32 4294901760, %v2374_v37 }
 0x55c   : > { %4292 = vset.pattern.permute.xlu1 %v4389_v36  ;;  %v2376_v47 = vsub.f32 %v2374_v37, %v2375_v43 }
 0x55d   : > { %3385 = vperm.xlu1 %4292, %v3382_v40   ;;  %3660 = vperm.xlu0 %4290, %v3651_v41   ;;  %v2356_v40 = vand.u32 4294901760, %v2355_v34 }
 0x561   : > { %4293 = vset.pattern.permute.xlu1 %v4390_v39 }
 0x562   : > { %3654 = vperm.xlu1 %4293, %v3651_v41   ;;  %v2363_v41 = vand.u32 4294901760, %v2362_v35 }
 0x5cc   : > { %v1722_v36 = vpop.xlane.xlu1 %1721  ;;  %v1714_v49 = vpop.xlane.xlu0 %1713 }
 0x5cd   : > { %v1733_v53 = vsel %vm1731_vm5, %v1714_v49, %v1722_v36  ;;  %v2377_v36 = vand.u32 4294901760, %v2376_v47  ;;  %v4748_v47 = vsub.s32 2, %v4636_v58 }
 0x5d0   : > { %v1719_v50 = vpop.xlane.xlu1 %1718  ;;  %v1711_v51 = vpop.xlane.xlu0 %1710 }
 0x5d1   : > { %v1732_v54 = vsel %vm1731_vm5, %v1711_v51, %v1719_v50  ;;  %v4146_v50 = vpack.c.bf16 %v2360_v30, %v2353_v29  ;;  %v4150_v51 = vpack.c.bf16 %v2374_v37, %v2367_v38  ;;  %vm3101_vm5 = vcmask 850944  }
 0x5d4   : > { %v1730_v55 = vpop.xlane.xlu1 %1729  ;;  %v1727_v39 = vpop.xlane.xlu0 %1726 }
 0x5d5   : > { %v1736_v56 = vsel %vm1734_vm6, %v1733_v53, %v1730_v55  ;;  %v1735_v57 = vsel %vm1734_vm6, %v1732_v54, %v1727_v39  ;;  %v3776_v53 = vld [vmem:[%s5102_s4 + $0x3] ss:$0 sm:$0xff]  ;;  %s5117_s4 = smov 32   ;;  %vm3103_vm6 = vcmask 916480  }
 0x5d6   : > { %v1742_v60 = vsel %vm1737_vm7, %v1736_v56, 0  ;;  %v1739_v61 = vsel %vm1737_vm7, %v1735_v57, 0  ;;  %vm3105_vm7 = vcmask 982016  }
 0x5d7   : > { %v1824_v62 = vand.u32 4294901760, %v1742_v60  ;;  %v1814_v63 = vand.u32 4294901760, %v1739_v61 }
 0x5d8   : > { %v3117_v2 = vpop.permute.xlu1 %3116 }
 0x5d9   : > { %v1825_v3 = vsub.f32 %v1742_v60, %v1824_v62  ;;  %v1815_v4 = vsub.f32 %v1739_v61, %v1814_v63  ;;  %v3119_v8 = vmul.f32 %v3117_v2, %v4693_v1 }
 0x5db   : > { %v1826_v6 = vand.u32 4294901760, %v1825_v3  ;;  %v1816_v9 = vand.u32 4294901760, %v1815_v4 }
 0x5dc   : > { %v3386_v10 = vpop.permute.xlu1 %3385 }
 0x5dd   : > { %v3388_v11 = vmul.f32 %v3386_v10, %v4697_v5  ;;  %v1817_v12 = vsub.f32 %v1815_v4, %v1816_v9  ;;  %v1827_v13 = vsub.f32 %v1825_v3, %v1826_v6 }
 0x5df   : > { %v4701_v14 = vadd.f32 %v3388_v11, %v3119_v8  ;;  %v1818_v15 = vand.u32 4294901760, %v1817_v12  ;;  %v1828_v16 = vand.u32 4294901760, %v1827_v13  ;;  %v3777_v13 = vld [vmem:[%s5062_s7] ss:$0 sm:$0xff] }
 0x5e1   : > { %3988 = vmatprep.mubr.f32.mxu0 %v1818_v15 }
 0x5e2   : > { %3989 = vmatmul.mubr.f32.vlgmr.msra.gmra.mrb[2].mxu0 %v1828_v16 }
 0x5e3   : > { %3992 = vmatpush3.msra.mxu0 %v1839_v48  ;;  %3993 = vmatprep.mubr.f32.mxu0 %v1814_v63 }
 0x5e4   : > { %3996 = vmatprep.subr.mxu0 %v1836_v45 }
 0x5ea   : > { %3994 = vmatmul.mubr.f32.vlgmr.msra.gmra.mrb[2].mxu0 %v1824_v62 }
 0x5eb   : > { %3997 = vmatpush3.msra.mxu0 %v1836_v45  ;;  %3998 = vmatprep.mubr.f32.mxu0 %v1815_v4  ;;  %v4166_v45 = vpack.c.bf16 %v2375_v43, %v2368_v42 }
 0x5ec   : > { %4001 = vmatprep.subr.mxu0 %v1749_v44 }
 0x5f2   : > { %3999 = vmatmul.mubr.f32.vlgmr.msra.gmra.mrb[2].mxu0 %v1825_v3 }
 0x5f3   : > { %4002 = vmatpush3.msra.mxu0 %v1749_v44  ;;  %4003 = vmatprep.mubr.f32.mxu0 %v1816_v9 }
 0x5f4   : > { %4006 = vmatprep.subr.mxu0 %v1837_v46 }
 0x5fa   : > { %4004 = vmatmul.mubr.f32.vlgmr.msra.gmra.mrb[2].mxu0 %v1826_v6 }
 0x5fb   : > { %4007 = vmatpush3.msra.mxu0 %v1837_v46  ;;  %4008 = vmatprep.mubr.f32.mxu0 %v1814_v63  ;;  %v2369_v46 = vsub.f32 %v2367_v38, %v2368_v42 }
 0x5fc   : > { %4011 = vmatprep.subr.mxu0 %v1749_v44 }
 0x5fd   : > { %v2370_v48 = vand.u32 4294901760, %v2369_v46 }
 0x5ff   : > { %v4142_v49 = vpack.c.bf16 %v2377_v36, %v2370_v48  ;;  %v2874_v48 = vsub.s32 3, %v4636_v58 }
 0x602   : > { %4009 = vmatmul.mubr.f32.vlgmr.msra.gmra.mrb[2].mxu0 %v1824_v62 }
 0x603   : > { %4012 = vmatpush3.msra.mxu0 %v1749_v44  ;;  %4013 = vmatprep.mubr.f32.mxu0 %v1814_v63  ;;  %v4138_v44 = vpack.c.bf16 %v2363_v41, %v2356_v40  ;;  %v4741_v40 = vpop.permute.xlu0 %3660 }
 0x604   : > { %4155 = vmatprep.subr.bf16.mxu0 %v4709_v20 }
 0x605   : > { %4139 = vmatprep.subr.bf16.mxu1 %v4138_v44 }
 0x60a   : > { %4014 = vmatmul.mubr.f32.vlgmr.msra.gmra.mrb[2].mxu0 %v1824_v62 }
 0x60b   : > { %4157 = vmatpush3.bf16.msra.mxu0 %v4709_v20 }
 0x60c   : > { %4159 = vmatprep.subr.bf16.mxu0 %v4721_v28 }
 0x60f   : > { %4161 = vmatpush3.bf16.msra.mxu0 %v4721_v28 }
 0x610   : > { %4163 = vmatprep.subr.bf16.mxu0 %v4162_v33 }
 0x6dd   : > { %v4015_v54 = vpop.f32.mrb[2].mxu0 }
 0x6de   : > { %v2238_v55 = vadd.f32 %v4015_v54, %v4607_v25  ;;  %v2227_v39 = vpop.f32.mrb[3].mxu0  ;;  %v3145_v54 = vsub.s32 6, %v4636_v58 }
 0x6df   : > { %v2237_v56 = vadd.f32 %v2227_v39, %v4603_v21  ;;  %v3156_v39 = vsub.s32 7, %v4636_v58 }
 0x6e0   : > { %v2244_v57 = vadd.f32 %v3776_v53, %v2238_v55 }
 0x6e1   : > { %v2243_v60 = vadd.f32 %v3776_v53, %v2237_v56  ;;  %v3134_v53 = vsub.s32 5, %v4636_v58 }
 0x6e2   : > { %v2260_v61 = vsel %vm879_vm2, %v2244_v57, 0 }
 0x6e3   : > { %v2341_v62 = vand.u32 4294901760, %v2260_v61  ;;  %v2257_v63 = vsel %vm879_vm2, %v2243_v60, 0  ;;  %v4757_v60 = vpop.permute.xlu1 %3654 }
 0x6e4   : > { %v2331_v2 = vand.u32 4294901760, %v2257_v63 }
 0x6e5   : > { %v2342_v3 = vsub.f32 %v2260_v61, %v2341_v62 }
 0x6e6   : > { %v2332_v4 = vsub.f32 %v2257_v63, %v2331_v2 }
 0x6e7   : > { %v2343_v6 = vand.u32 4294901760, %v2342_v3 }
 0x6e8   : > { %v2333_v8 = vand.u32 4294901760, %v2332_v4 }
 0x6e9   : > { %v2344_v9 = vsub.f32 %v2342_v3, %v2343_v6 }
 0x6ea   : > { %4057 = vmatprep.mubr.f32.mxu0 %v2333_v8  ;;  %v2334_v10 = vsub.f32 %v2332_v4, %v2333_v8 }
 0x6eb   : > { %4058 = vmatmul.mubr.f32.vlgmr.msra.gmra.mrb[4].mxu0 %v2343_v6  ;;  %v2345_v21 = vand.u32 4294901760, %v2344_v9 }
 0x6ec   : > { %4165 = vmatpush3.bf16.msra.mxu0 %v4162_v33  ;;  %4068 = vmatprep.mubr.f32.mxu0 %v2331_v2  ;;  %v2335_v25 = vand.u32 4294901760, %v2334_v10 }
 0x6ed   : > { %4167 = vmatprep.subr.bf16.mxu0 %v4166_v45 }
 0x6ee   : > { %4024 = vmatprep.mubr.f32.mxu1 %v2335_v25 }
 0x6ef   : > { %4025 = vmatmul.mubr.f32.vlgmr.msra.gmra.mrb[2].mxu1 %v2345_v21 }
 0x6f0   : > { %4141 = vmatpush3.bf16.msra.mxu1 %v4138_v44  ;;  %4035 = vmatprep.mubr.f32.mxu1 %v2331_v2 }
 0x6f1   : > { %4169 = vmatpush3.bf16.msra.mxu0 %v4166_v45  ;;  %4143 = vmatprep.subr.bf16.mxu1 %v4142_v49 }
 0x6f2   : > { %4171 = vmatprep.subr.bf16.mxu0 %v4709_v20 }
 0x6f4   : > { %4145 = vmatpush3.bf16.msra.mxu1 %v4142_v49  ;;  %4069 = vmatmul.mubr.f32.vlgmr.msra.gmra.mrb[4].mxu0 %v2341_v62 }
 0x6f5   : > { %4173 = vmatpush3.bf16.msra.mxu0 %v4709_v20  ;;  %4079 = vmatprep.mubr.f32.mxu0 %v2331_v2 }
 0x6f6   : > { %4147 = vmatprep.subr.bf16.mxu1 %v4146_v50  ;;  %4175 = vmatprep.subr.bf16.mxu0 %v4721_v28 }
 0x6f7   : > { %4036 = vmatmul.mubr.f32.vlgmr.msra.gmra.mrb[2].mxu1 %v2341_v62 }
 0x6f8   : > { %4149 = vmatpush3.bf16.msra.mxu1 %v4146_v50  ;;  %4046 = vmatprep.mubr.f32.mxu1 %v2332_v4 }
 0x6f9   : > { %4177 = vmatpush3.bf16.msra.mxu0 %v4721_v28  ;;  %4151 = vmatprep.subr.bf16.mxu1 %v4150_v51 }
 0x6fc   : > { %4153 = vmatpush3.bf16.msra.mxu1 %v4150_v51  ;;  %4080 = vmatmul.mubr.f32.vlgmr.msra.gmra.mrb[4].mxu0 %v2341_v62 }
 0x6ff   : > { %4047 = vmatmul.mubr.f32.vlgmr.msra.gmra.mrb[2].mxu1 %v2342_v3 }
 0x7cf   : > { %v4081_v11 = vpop.f32.mrb[4].mxu0 }
 0x7d0   : > { %v2780_v12 = vpop.f32.mrb[5].mxu0 }
 0x7d2   : > { %v4048_v15 = vpop.f32.mrb[2].mxu1 }
 0x7d3   : > { %v4180_v16 = vadd.f32 %v4048_v15, %v3777_v13  ;;  %v2524_v7 = vpop.f32.mrb[3].mxu1 }
 0x7d4   : > { %v4182_v17 = vadd.f32 %v3777_v13, %v2524_v7 }
 0x7d5   : > { %v4181_v18 = vadd.f32 %v4180_v16, %v4081_v11 }
 0x7d6   : > { %v4183_v19 = vadd.f32 %v4182_v17, %v2780_v12 }
 0x7d7   : > { %v2791_v20 = vmul.f32 %v4181_v18, %v4181_v18 }
 0x7d8   : > { %v2790_v23 = vmul.f32 %v4183_v19, %v4183_v19 }
 0x7d9   : > { %v2794_v24 = vsel %vm2792_vm8, %v2791_v20, 0.0 }
 0x7da   : > { %v2793_v26 = vsel %vm2792_vm8, %v2790_v23, 0.0 }
 0x7db   : > { %v2795_v27 = vadd.f32 %v2794_v24, %v2793_v26 }
 0x7dd   : > { %v2796_v28 = vrot.slane %v2795_v27, 4 }
 0x7df   : > { %v2797_v29 = vadd.f32 %v2796_v28, %v2795_v27 }
 0x7e1   : > { %v2798_v30 = vrot.slane %v2797_v29, 2 }
 0x7e3   : > { %v2799_v31 = vadd.f32 %v2798_v30, %v2797_v29 }
 0x7e5   : > { %v2800_v32 = vrot.slane %v2799_v31, 1 }
 0x7e7   : > { %v2801_v33 = vadd.f32 %v2800_v32, %v2799_v31 }
 0x7e9   : > { %v2802_v34 = vmul.f32 0.0625, %v2801_v33 }
 0x7eb   : > { %4306 = vrsqrt.f32 %v2802_v34 }
 0x7f5   : > { %v4307_v35 = vpop.eup %4306 }
 0x7f6   : > { %v2804_v38 = vmul.f32 %v4307_v35, %v4183_v19  ;;  %v2805_v37 = vmul.f32 %v4307_v35, %v4181_v18 }
 0x7f8   : > { %2806 = vxpose.xlu0.b32.start [1/2] (short) (narrow) %v2804_v38, 16 }
 0x7fc   : > { %2807 = vxpose.xlu0.b32.end [2/2] (short) (narrow) %v2805_v37, 16 }
 0x878   : > { %v2822_v41 = vpop.trf.xlu0 }
 0x879   : > { %v2842_v42 = vrot.slane %v2822_v41, %v4686_v52  ;;  %v2853_v45 = vrot.slane %v2822_v41, %v4689_v59  ;;  %v2864_v36 = vrot.slane %v2822_v41, %v4748_v47  ;;  %v2875_v50 = vrot.slane %v2822_v41, %v2874_v48 }
 0x87a   : > { %v3146_v55 = vrot.slane %v2822_v41, %v3145_v54  ;;  %v3157_v56 = vrot.slane %v2822_v41, %v3156_v39 }
 0x87b   : > { %2844 = vbcast.lane.b32.xlu1 %v2842_v42, 256 }
 0x87c   : > { %v2823_v43 = vpop.trf.xlu0 }
 0x87d   : > { %v3393_v44 = vrot.slane %v2823_v43, %v4686_v52  ;;  %v3404_v46 = vrot.slane %v2823_v43, %v4689_v59  ;;  %v3426_v49 = vrot.slane %v2823_v43, %v2874_v48  ;;  %v3123_v52 = vsub.s32 4, %v4636_v58 }
 0x87e   : > { %v3135_v59 = vrot.slane %v2822_v41, %v3134_v53  ;;  %v3415_v57 = vrot.slane %v2823_v43, %v4748_v47 }
 0x87f   : > { %2848 = vbcast.lane.b32.xlu1 %v2842_v42, 264  ;;  %3395 = vbcast.lane.b32.xlu0 %v3393_v44, 256  ;;  %v3124_v51 = vrot.slane %v2822_v41, %v3123_v52 }
 0x883   : > { %2855 = vbcast.lane.b32.xlu1 %v2853_v45, 256  ;;  %3410 = vbcast.lane.b32.xlu0 %v3404_v46, 264 }
 0x887   : > { %2866 = vbcast.lane.b32.xlu1 %v2864_v36, 256  ;;  %3432 = vbcast.lane.b32.xlu0 %v3426_v49, 264 }
 0x88b   : > { %2877 = vbcast.lane.b32.xlu1 %v2875_v50, 256 }
 0x88f   : > { %3126 = vbcast.lane.b32.xlu1 %v3124_v51, 256 }
 0x893   : > { %3137 = vbcast.lane.b32.xlu1 %v3135_v59, 256 }
 0x897   : > { %3148 = vbcast.lane.b32.xlu1 %v3146_v55, 256 }
 0x89b   : > { %3159 = vbcast.lane.b32.xlu1 %v3157_v56, 256 }
 0x89f   : > { %2859 = vbcast.lane.b32.xlu1 %v2853_v45, 264 }
 0x8a3   : > { %2870 = vbcast.lane.b32.xlu1 %v2864_v36, 264 }
 0x8a7   : > { %2881 = vbcast.lane.b32.xlu1 %v2875_v50, 264 }
 0x8ab   : > { %3130 = vbcast.lane.b32.xlu1 %v3124_v51, 264 }
 0x8af   : > { %3141 = vbcast.lane.b32.xlu1 %v3135_v59, 264 }
 0x8b3   : > { %3152 = vbcast.lane.b32.xlu1 %v3146_v55, 264 }
 0x8b7   : > { %3163 = vbcast.lane.b32.xlu1 %v3157_v56, 264 }
 0x8bb   : > { %3406 = vbcast.lane.b32.xlu1 %v3404_v46, 256 }
 0x8bf   : > { %3417 = vbcast.lane.b32.xlu1 %v3415_v57, 256 }
 0x8c3   : > { %3428 = vbcast.lane.b32.xlu1 %v3426_v49, 256 }
 0x8c7   : > { %3399 = vbcast.lane.b32.xlu1 %v3393_v44, 264 }
 0x8cb   : > { %3421 = vbcast.lane.b32.xlu1 %v3415_v57, 264 }
 0x8ed   : > { %v2845_v58 = vpop.permute.xlu1 %2844 }
 0x8f1   : > { %v2849_v61 = vpop.permute.xlu1 %2848 }
 0x8f5   : > { %v2856_v62 = vpop.permute.xlu1 %2855 }
 0x8f9   : > { %v2867_v63 = vpop.permute.xlu1 %2866 }
 0x8fa   : > { %v2883_v2 = vcombine.low %v2845_v58, %v2867_v63  ;;  %v2884_v4 = vcombine.high %v2845_v58, %v2867_v63 }
 0x8fc   : > { %v4760_v9 = vrot.slane %v2883_v2, %v4640_v0  ;;  %v2898_v11 = vrot.slane %v2884_v4, %v4640_v0 }
 0x8fd   : > { %v2878_v3 = vpop.permute.xlu1 %2877 }
 0x8fe   : > { %v2899_v6 = vcombine.low %v2856_v62, %v2878_v3  ;;  %v2900_v8 = vcombine.high %v2856_v62, %v2878_v3 }
 0x900   : > { %v4763_v10 = vrot.slane %v2899_v6, %v4640_v0  ;;  %v2914_v25 = vrot.slane %v2900_v8, %v4640_v0 }
 0x901   : > { %v3127_v21 = vpop.permute.xlu1 %3126 }
 0x902   : > { %v2916_v12 = vcombine.high %v4760_v9, %v4763_v10  ;;  %v2931_v13 = vcombine.low %v2898_v11, %v2914_v25  ;;  %v2932_v7 = vcombine.high %v2898_v11, %v2914_v25 }
 0x904   : > { %v4770_v15 = vrot.slane %v2916_v12, %v4651_v22  ;;  %v4775_v17 = vrot.slane %v2931_v13, %v4651_v22  ;;  %v4780_v20 = vrot.slane %v2932_v7, %v4651_v22  ;;  %v2915_v13 = vcombine.low %v4760_v9, %v4763_v10  ;;  %v3396_v9 = vpop.permute.xlu0 %3395 }
 0x905   : > { %v3138_v16 = vpop.permute.xlu1 %3137 }
 0x906   : > { %3024 = vrot.lane.b32.xlu0 %v4770_v15, %s5093_s24 }
 0x909   : > { %v3149_v18 = vpop.permute.xlu1 %3148 }
 0x90a   : > { %3032 = vrot.lane.b32.xlu0 %v4775_v17, %s5092_s22  ;;  %v3166_v19 = vcombine.high %v3127_v21, %v3149_v18  ;;  %v3165_v50 = vcombine.low %v3127_v21, %v3149_v18 }
 0x90c   : > { %v3180_v26 = vrot.slane %v3166_v19, %v4640_v0  ;;  %v4812_v55 = vrot.slane %v3165_v50, %v4640_v0 }
 0x90d   : > { %v3160_v23 = vpop.permute.xlu1 %3159 }
 0x90e   : > { %v3182_v24 = vcombine.high %v3138_v16, %v3160_v23  ;;  %3040 = vrot.lane.b32.xlu0 %v4780_v20, %s5104_s27  ;;  %v3181_v46 = vcombine.low %v3138_v16, %v3160_v23 }
 0x910   : > { %v3196_v27 = vrot.slane %v3182_v24, %v4640_v0  ;;  %v4806_v53 = vrot.slane %v3181_v46, %v4640_v0 }
 0x911   : > { %v2860_v28 = vpop.permute.xlu1 %2859 }
 0x912   : > { %v3213_v29 = vcombine.low %v3180_v26, %v3196_v27  ;;  %v3214_v30 = vcombine.high %v3180_v26, %v3196_v27  ;;  %v3198_v56 = vcombine.high %v4812_v55, %v4806_v53 }
 0x914   : > { %v4787_v31 = vrot.slane %v3213_v29, %v4651_v22  ;;  %v4792_v34 = vrot.slane %v3214_v30, %v4651_v22  ;;  %v4824_v3 = vrot.slane %v3198_v56, %v4651_v22  ;;  %v4394_v29 = vmov 0.0  }
 0x915   : > { %v2871_v32 = vpop.permute.xlu1 %2870  ;;  %v2950_v50 = vcombine.high %v4780_v20, %v4394_v29 }
 0x916   : > { %3314 = vrot.lane.b32.xlu1 %v4787_v31, %s5092_s22  ;;  %v2951_v33 = vcombine.low %v2849_v61, %v2871_v32  ;;  %v2952_v44 = vcombine.high %v2849_v61, %v2871_v32  ;;  %s5112_s22 = smov 72  }
 0x918   : > { %v2959_v37 = vrot.slane %v2951_v33, %v4640_v0  ;;  %v2966_v51 = vrot.slane %v2952_v44, %v4640_v0  ;;  %v2948_v33 = vcombine.high %v4770_v15, %v4394_v29 }
 0x919   : > { %v2882_v35 = vpop.permute.xlu1 %2881 }
 0x91a   : > { %v2967_v38 = vcombine.low %v2860_v28, %v2882_v35  ;;  %3322 = vrot.lane.b32.xlu1 %v4792_v34, %s5104_s27  ;;  %v2968_v41 = vcombine.high %v2860_v28, %v2882_v35  ;;  %v4843_v28 = vrot.slane %v2915_v13, %v4651_v22  ;;  %v3231_v35 = vcombine.high %v4787_v31, %v4394_v29 }
 0x91b   : > { %v3232_v13 = vcombine.high %v4792_v34, %v4394_v29 }
 0x91c   : > { %v2975_v42 = vrot.slane %v2967_v38, %v4640_v0  ;;  %v2982_v48 = vrot.slane %v2968_v41, %v4640_v0  ;;  %v2947_v30 = vcombine.high %v4843_v28, %v4394_v29  ;;  %v3411_v38 = vpop.permute.xlu0 %3410 }
 0x91d   : > { %v3131_v43 = vpop.permute.xlu1 %3130 }
 0x91e   : > { %v2983_v45 = vcombine.low %v2959_v37, %v2975_v42  ;;  %v2984_v36 = vcombine.high %v2959_v37, %v2975_v42  ;;  %v2999_v59 = vcombine.low %v2966_v51, %v2982_v48  ;;  %v3000_v24 = vcombine.high %v2966_v51, %v2982_v48 }
 0x920   : > { %v4800_v49 = vrot.slane %v2983_v45, %v4651_v22  ;;  %v4809_v54 = vrot.slane %v2984_v36, %v4651_v22  ;;  %v4819_v61 = vrot.slane %v2999_v59, %v4651_v22  ;;  %v4851_v32 = vrot.slane %v3000_v24, %v4651_v22  ;;  %v3433_v48 = vpop.permute.xlu0 %3432 }
 0x921   : > { %v3142_v52 = vpop.permute.xlu1 %3141  ;;  %v3518_v51 = vcombine.low %v3411_v38, %v3433_v48 }
 0x922   : > { %3048 = vrot.lane.b32.xlu0 %v4800_v49, %s5105_s16 }
 0x925   : > { %v3153_v39 = vpop.permute.xlu1 %3152 }
 0x926   : > { %3056 = vrot.lane.b32.xlu0 %v4809_v54, %s5106_s21  ;;  %v3233_v57 = vcombine.low %v3131_v43, %v3153_v39  ;;  %v3234_v58 = vcombine.high %v3131_v43, %v3153_v39  ;;  %v2949_v43 = vcombine.high %v4775_v17, %v4394_v29 }
 0x928   : > { %v3241_v4 = vrot.slane %v3233_v57, %v4640_v0  ;;  %v3248_v6 = vrot.slane %v3234_v58, %v4640_v0  ;;  %v3197_v57 = vcombine.low %v4812_v55, %v4806_v53  ;;  %v3015_v58 = vcombine.high %v4800_v49, %v4394_v29 }
 0x929   : > { %v3164_v62 = vpop.permute.xlu1 %3163  ;;  %v3016_v53 = vcombine.high %v4809_v54, %v4394_v29  ;;  %v3230_v54 = vcombine.high %v4824_v3, %v4394_v29 }
 0x92a   : > { %v3249_v63 = vcombine.low %v3142_v52, %v3164_v62  ;;  %v3250_v2 = vcombine.high %v3142_v52, %v3164_v62  ;;  %3064 = vrot.lane.b32.xlu0 %v4819_v61, %s5107_s28  ;;  %v3526_v62 = vrot.slane %v3518_v51, %v4640_v0 }
 0x92c   : > { %v3257_v8 = vrot.slane %v3249_v63, %v4640_v0  ;;  %v3264_v25 = vrot.slane %v3250_v2, %v4640_v0 }
 0x92d   : > { %v3407_v21 = vpop.permute.xlu1 %3406 }
 0x92e   : > { %v3265_v11 = vcombine.low %v3241_v4, %v3257_v8  ;;  %v3281_v12 = vcombine.low %v3248_v6, %v3264_v25  ;;  %3306 = vrot.lane.b32.xlu0 %v4824_v3, %s5093_s24  ;;  %v3266_v16 = vcombine.high %v3241_v4, %v3257_v8  ;;  %v3282_v7 = vcombine.high %v3248_v6, %v3264_v25  ;;  %s5113_s24 = smov 56  }
 0x92f   : > { %v4887_v6 = vrot.slane %v3197_v57, %v4651_v22 }
 0x930   : > { %v3289_v18 = vrot.slane %v3281_v12, %v4651_v22  ;;  %v3273_v19 = vrot.slane %v3265_v11, %v4651_v22  ;;  %v4839_v26 = vrot.slane %v3282_v7, %v4651_v22  ;;  %v3280_v27 = vrot.slane %v3266_v16, %v4651_v22 }
 0x931   : > { %v3418_v23 = vpop.permute.xlu1 %3417  ;;  %v3229_v25 = vcombine.high %v4887_v6, %v4394_v29  ;;  %v3519_v12 = vcombine.high %v3411_v38, %v3433_v48 }
 0x932   : > { %3346 = vrot.lane.b32.xlu1 %v3289_v18, %s5107_s28  ;;  %3330 = vrot.lane.b32.xlu0 %v3273_v19, %s5105_s16  ;;  %v3434_v42 = vcombine.low %v3396_v9, %v3418_v23  ;;  %v3297_v44 = vcombine.high %v3273_v19, %v4394_v29  ;;  %v3435_v45 = vcombine.high %v3396_v9, %v3418_v23 }
 0x933   : > { %v3298_v52 = vcombine.high %v3280_v27, %v4394_v29  ;;  %v3299_v20 = vcombine.high %v3289_v18, %v4394_v29  ;;  %v3533_v3 = vrot.slane %v3519_v12, %v4640_v0  ;;  %v3017_v18 = vcombine.high %v4819_v61, %v4394_v29 }
 0x934   : > { %v3442_v46 = vrot.slane %v3434_v42, %v4640_v0  ;;  %v3449_v17 = vrot.slane %v3435_v45, %v4640_v0 }
 0x935   : > { %v3429_v10 = vpop.permute.xlu1 %3428 }
 0x936   : > { %3354 = vrot.lane.b32.xlu1 %v4839_v26, %s5108_s17  ;;  %3338 = vrot.lane.b32.xlu0 %v3280_v27, %s5106_s21  ;;  %v3450_v41 = vcombine.low %v3407_v21, %v3429_v10  ;;  %v3451_v15 = vcombine.high %v3407_v21, %v3429_v10 }
 0x938   : > { %v3458_v31 = vrot.slane %v3450_v41, %v4640_v0  ;;  %v3465_v59 = vrot.slane %v3451_v15, %v4640_v0 }
 0x939   : > { %v3400_v37 = vpop.permute.xlu1 %3399 }
 0x93a   : > { %3020 = vrot.lane.b32.xlu1 %v2947_v30, %s5109_s23  ;;  %3072 = vrot.lane.b32.xlu0 %v4851_v32, %s5108_s17  ;;  %v3467_v39 = vcombine.high %v3442_v46, %v3458_v31  ;;  %v3482_v63 = vcombine.low %v3449_v17, %v3465_v59  ;;  %v3466_v8 = vcombine.low %v3442_v46, %v3458_v31 }
 0x93b   : > { %v3483_v19 = vcombine.high %v3449_v17, %v3465_v59  ;;  %v3018_v30 = vcombine.high %v4851_v32, %v4394_v29 }
 0x93c   : > { %v3481_v4 = vrot.slane %v3467_v39, %v4651_v22  ;;  %v3490_v55 = vrot.slane %v3482_v63, %v4651_v22  ;;  %v4902_v11 = vrot.slane %v3466_v8, %v4651_v22 }
 0x93d   : > { %v3422_v36 = vpop.permute.xlu1 %3421  ;;  %v3497_v9 = vrot.slane %v3483_v19, %v4651_v22 }
 0x93e   : > { %3028 = vrot.lane.b32.xlu1 %v2948_v33, %s5110_s25  ;;  %3318 = vrot.lane.b32.xlu0 %v3231_v35, %s5111_s29  ;;  %v3502_v56 = vcombine.low %v3400_v37, %v3422_v36  ;;  %v3503_v16 = vcombine.high %v3400_v37, %v3422_v36  ;;  %v3498_v7 = vcombine.high %v4902_v11, %v4394_v29 }
 0x93f   : > { %v3499_v24 = vcombine.high %v3481_v4, %v4394_v29  ;;  %v3500_v10 = vcombine.high %v3490_v55, %v4394_v29  ;;  %v3300_v35 = vcombine.high %v4839_v26, %v4394_v29  ;;  %v3501_v37 = vcombine.high %v3497_v9, %v4394_v29 }
 0x940   : > { %v3510_v2 = vrot.slane %v3502_v56, %v4640_v0  ;;  %v3517_v23 = vrot.slane %v3503_v16, %v4640_v0 }
 0x942   : > { %3036 = vrot.lane.b32.xlu1 %v2949_v43, %s5111_s29  ;;  %3334 = vrot.lane.b32.xlu0 %v3297_v44, %s5112_s22  ;;  %v3535_v49 = vcombine.high %v3510_v2, %v3526_v62  ;;  %v3534_v34 = vcombine.low %v3510_v2, %v3526_v62  ;;  %v3550_v27 = vcombine.low %v3517_v23, %v3533_v3 }
 0x943   : > { %v3551_v33 = vcombine.high %v3517_v23, %v3533_v3 }
 0x944   : > { %v3549_v21 = vrot.slane %v3535_v49, %v4651_v22  ;;  %v3558_v61 = vrot.slane %v3550_v27, %v4651_v22  ;;  %v3542_v0 = vrot.slane %v3534_v34, %v4651_v22 }
 0x945   : > { %v3565_v38 = vrot.slane %v3551_v33, %v4651_v22 }
 0x946   : > { %3044 = vrot.lane.b32.xlu1 %v2950_v50, %s5113_s24  ;;  %3342 = vrot.lane.b32.xlu0 %v3298_v52, %s5114_s0  ;;  %v3566_v41 = vcombine.high %v3542_v0, %v4394_v29  ;;  %v3567_v32 = vcombine.high %v3549_v21, %v4394_v29  ;;  %v3568_v26 = vcombine.high %v3558_v61, %v4394_v29 }
 0x947   : > { %v3569_v22 = vcombine.high %v3565_v38, %v4394_v29 }
 0x94a   : > { %3052 = vrot.lane.b32.xlu1 %v3015_v58, %s5112_s22  ;;  %3350 = vrot.lane.b32.xlu0 %v3299_v20, %s5115_s1 }
 0x94e   : > { %3060 = vrot.lane.b32.xlu1 %v3016_v53, %s5114_s0  ;;  %3575 = vrot.lane.b32.xlu0 %v3481_v4, %s5116_s3  ;;  %s5118_s3 = smov 120  }
 0x952   : > { %3302 = vrot.lane.b32.xlu1 %v3229_v25, %s5109_s23  ;;  %3583 = vrot.lane.b32.xlu0 %v3490_v55, %s5117_s4  ;;  %s5119_s4 = sshll.u32 %s4552_s26, 2 }
 0x956   : > { %3310 = vrot.lane.b32.xlu1 %v3230_v54, %s5110_s25  ;;  %3607 = vrot.lane.b32.xlu0 %v3549_v21, %s5106_s21 }
 0x95a   : > { %3326 = vrot.lane.b32.xlu1 %v3232_v13, %s5113_s24  ;;  %3571 = vrot.lane.b32.xlu0 %v3498_v7, %s5109_s23 }
 0x95e   : > { %3068 = vrot.lane.b32.xlu1 %v3017_v18, %s5115_s1  ;;  %3579 = vrot.lane.b32.xlu0 %v3499_v24, %s5110_s25 }
 0x962   : > { %3591 = vrot.lane.b32.xlu1 %v3497_v9, %s5104_s27  ;;  %3587 = vrot.lane.b32.xlu0 %v3500_v10, %s5111_s29  ;;  %s3779_s27 = sshll.u32 %s4467_s13, 6  ;;  %s4395_s13 = smov [#allocation2]  }
 0x963   : > { %s4313_s29 = sshll.u32 %s4395_s13, 4  ;;  %s4314_s29 = int_to_ptr.vmem [resolvable:$false] %s4313_s29 }
 0x966   : > { %3615 = vrot.lane.b32.xlu0 %v3558_v61, %s5107_s28  ;;  %3599 = vrot.lane.b32.xlu1 %v3542_v0, %s5105_s16 }
 0x96a   : > { %3358 = vrot.lane.b32.xlu0 %v3300_v35, %s5118_s3  ;;  %3076 = vrot.lane.b32.xlu1 %v3018_v30, %s5118_s3 }
 0x96e   : > { %3623 = vrot.lane.b32.xlu0 %v3565_v38, %s5108_s17  ;;  %3595 = vrot.lane.b32.xlu1 %v3501_v37, %s5113_s24  ;;  %s366_s24 = scalar_lea.vmem %s5057_s2, %s5119_s4  ;;  %s5013_s17 = scalar_lea.hbm %s5064_s9, %s3779_s27 }
 0x972   : > { %3603 = vrot.lane.b32.xlu1 %v3566_v41, %s5112_s22 }
 0x976   : > { %3611 = vrot.lane.b32.xlu1 %v3567_v32, %s5114_s0  ;;  %s350_s0 = sand.u32 1, %s4363_s10  }
 0x977   : > { %s3668_s23 = scalar_lea.sflag [#allocation3], %s350_s0 }
 0x978   : > { %v3025_v42 = vpop.permute.xlu0 %3024 }
 0x97a   : > { %3619 = vrot.lane.b32.xlu1 %v3568_v26, %s5115_s1  ;;  %s3768_s1 = sshll.u32 %s350_s0, 2 }
 0x97b   : > { %s352_s16 = scalar_lea.vmem [#allocation2], %s3768_s1 }
 0x97c   : > { %v3033_v43 = vpop.permute.xlu0 %3032  ;;  %s3681_s21 = sshll.u32 %s352_s16, 4  ;;  %s5015_s21 = int_to_ptr.vmem [resolvable:$true] %s3681_s21 }
 0x97d   : > { %s4309_s25 = scalar_lea.vmem %s5015_s21, 64  ;;  %p4316_p1 = scmp.lt.s32.totalorder %s5015_s21, %s4314_s29 }
 0x97e   : > { %3627 = vrot.lane.b32.xlu1 %v3569_v22, %s5118_s3  ;;  %p4310_p12 = scmp.ne.s32.totalorder %s5015_s21, %s4309_s25  ;;  %s4315_s3 = scalar_lea.vmem %s4314_s29, 128 }
 0x97f   : > { %p4317_p2 = scmp.lt.s32.totalorder %s4315_s3, %s4309_s25 }
 0x980   : > { %v3041_v44 = vpop.permute.xlu0 %3040  ;;  %p4311_p13 = pnand %p4310_p12, %p4484_p5 }
 0x981   : > { %p4318_p3 = por %p4317_p2, %p4316_p1 }
 0x982   : > { %p4312_p0 = pneg %p4311_p13 }
 0x984   : > { %p4319_p4 = pnand %p4318_p3, %p4312_p0 }
 0x988   : > { %v3315_v31 = vpop.permute.xlu1 %3314 }
 0x98c   : > { %v3323_v48 = vpop.permute.xlu1 %3322 }
 0x994   : > { %v3049_v45 = vpop.permute.xlu0 %3048 }
 0x998   : > { %v3057_v15 = vpop.permute.xlu0 %3056 }
 0x99c   : > { %v3065_v46 = vpop.permute.xlu0 %3064 }
 0x9a0   : > { %v3307_v36 = vpop.permute.xlu0 %3306 }
 0x9a4   : > { %v3347_v50 = vpop.permute.xlu1 %3346  ;;  %v3331_v52 = vpop.permute.xlu0 %3330 }
 0x9a8   : > { %v3355_v17 = vpop.permute.xlu1 %3354  ;;  %v3339_v51 = vpop.permute.xlu0 %3338 }
 0x9ac   : > { %v3021_v59 = vpop.permute.xlu1 %3020  ;;  %v4945_v39 = vpop.permute.xlu0 %3072 }
 0x9ad   : > { %v3079_v29 = vsel %vm1684_vm3, %v4843_v28, %v3021_v59 }
 0x9ae   : > { %v3081_v57 = vsel %vm3080_vm9, %v3079_v29, %v3025_v42 }
 0x9b0   : > { %v3029_v56 = vpop.permute.xlu1 %3028  ;;  %v3319_v58 = vpop.permute.xlu0 %3318 }
 0x9b1   : > { %v3083_v20 = vsel %vm3082_vm10, %v3081_v57, %v3029_v56 }
 0x9b2   : > { %v3084_v62 = vsel %vm879_vm2, %v3083_v20, %v3033_v43 }
 0x9b4   : > { %v3037_v63 = vpop.permute.xlu1 %3036  ;;  %v3335_v2 = vpop.permute.xlu0 %3334 }
 0x9b5   : > { %v3086_v4 = vsel %vm3085_vm11, %v3084_v62, %v3037_v63 }
 0x9b6   : > { %v3088_v53 = vsel %vm3087_vm12, %v3086_v4, %v3041_v44 }
 0x9b8   : > { %v3045_v28 = vpop.permute.xlu1 %3044  ;;  %v3343_v49 = vpop.permute.xlu0 %3342 }
 0x9b9   : > { %v3090_v55 = vsel %vm3089_vm13, %v3088_v53, %v3045_v28 }
 0x9ba   : > { %v3092_v8 = vsel %vm3091_vm14, %v3090_v55, %v3049_v45 }
 0x9bc   : > { %v3053_v25 = vpop.permute.xlu1 %3052  ;;  %v3351_v21 = vpop.permute.xlu0 %3350 }
 0x9bd   : > { %v3094_v54 = vsel %vm3093_vm15, %v3092_v8, %v3053_v25 }
 0x9be   : > { %v3096_v12 = vsel %vm3095_vm0, %v3094_v54, %v3057_v15 }
 0x9c0   : > { %v3061_v13 = vpop.permute.xlu1 %3060  ;;  %v3576_v16 = vpop.permute.xlu0 %3575 }
 0x9c1   : > { %v3098_v7 = vsel %vm3097_vm1, %v3096_v12, %v3061_v13 }
 0x9c2   : > { %v3100_v3 = vsel %vm3099_vm4, %v3098_v7, %v3065_v46  ;;  %v2838_v7 = vld [vmem:[%s366_s24] sm:$0xf] }
 0x9c4   : > { %v3303_v18 = vpop.permute.xlu1 %3302  ;;  %v3584_v19 = vpop.permute.xlu0 %3583 }
 0x9c5   : > { %v3361_v23 = vsel %vm1684_vm3, %v4887_v6, %v3303_v18 }
 0x9c6   : > { %v3362_v34 = vsel %vm3080_vm9, %v3361_v23, %v3307_v36 }
 0x9c8   : > { %v3311_v24 = vpop.permute.xlu1 %3310  ;;  %v3608_v27 = vpop.permute.xlu0 %3607 }
 0x9c9   : > { %v3363_v9 = vsel %vm3082_vm10, %v3362_v34, %v3311_v24 }
 0x9ca   : > { %v3364_v10 = vsel %vm879_vm2, %v3363_v9, %v3315_v31 }
 0x9cb   : > { %v3365_v61 = vsel %vm3085_vm11, %v3364_v10, %v3319_v58 }
 0x9cc   : > { %v3327_v0 = vpop.permute.xlu1 %3326  ;;  %v3366_v30 = vsel %vm3087_vm12, %v3365_v61, %v3323_v48  ;;  %v3572_v33 = vpop.permute.xlu0 %3571 }
 0x9cd   : > { %v3367_v35 = vsel %vm3089_vm13, %v3366_v30, %v3327_v0  ;;  %v3630_v15 = vsel %vm1684_vm3, %v4902_v11, %v3572_v33 }
 0x9ce   : > { %v3368_v38 = vsel %vm3091_vm14, %v3367_v35, %v3331_v52  ;;  %v3631_v31 = vsel %vm3080_vm9, %v3630_v15, %v3576_v16 }
 0x9cf   : > { %v3369_v6 = vsel %vm3093_vm15, %v3368_v38, %v3335_v2 }
 0x9d0   : > { %v3370_v37 = vsel %vm3095_vm0, %v3369_v6, %v3339_v51  ;;  %v3069_v41 = vpop.permute.xlu1 %3068  ;;  %v3580_v32 = vpop.permute.xlu0 %3579 }
 0x9d1   : > { %v3371_v26 = vsel %vm3097_vm1, %v3370_v37, %v3343_v49  ;;  %v3102_v36 = vsel %vm3101_vm5, %v3100_v3, %v3069_v41  ;;  %v3632_v52 = vsel %vm3082_vm10, %v3631_v31, %v3580_v32 }
 0x9d2   : > { %v3372_v22 = vsel %vm3099_vm4, %v3371_v26, %v3347_v50  ;;  %v3633_v50 = vsel %vm879_vm2, %v3632_v52, %v3584_v19  ;;  %v3104_v59 = vsel %vm3103_vm6, %v3102_v36, %v4945_v39  ;;  %v4308_v39 = vld [vmem:[%s4560_s14] sm:$0x7] }
 0x9d3   : > { %v3373_v42 = vsel %vm3101_vm5, %v3372_v22, %v3351_v21  ;;  %v3648_v4 = vrot.slane %v4308_v39, %v4748_v47 }
 0x9d4   : > { %v3592_v43 = vpop.permute.xlu1 %3591  ;;  %v3588_v44 = vpop.permute.xlu0 %3587  ;;  %v3374_v45 = vsel %vm3103_vm6, %v3373_v42, %v3355_v17 }
 0x9d5   : > { %v3634_v29 = vsel %vm3085_vm11, %v3633_v50, %v3588_v44  ;;  %v3657_v55 = vmul.f32 %v4757_v60, %v3648_v4 }
 0x9d6   : > { %v3635_v63 = vsel %vm3087_vm12, %v3634_v29, %v3592_v43 }
 0x9d7   : > { %v3658_v25 = vadd.f32 %v3657_v55, %v4701_v14 }
 0x9d8   : > { %v3600_v46 = vpop.permute.xlu1 %3599  ;;  %v3616_v48 = vpop.permute.xlu0 %3615 }
 0x9d9   : > { %v3663_v12 = vadd.f32 %v4741_v40, %v3658_v25 }
 0x9db   : > { %v3664_v18 = vmul.f32 %v3663_v12, %v2838_v7 }
 0x9dc   : > { %v3077_v51 = vpop.permute.xlu1 %3076  ;;  %v3359_v17 = vpop.permute.xlu0 %3358 }
 0x9dd   : > { %v3106_v11 = vsel %vm3105_vm7, %v3104_v59, %v3077_v51  ;;  %v3375_v56 = vsel %vm3105_vm7, %v3374_v45, %v3359_v17 }
 0x9de   : > { %v3111_v57 = vmul.f32 %v4693_v1, %v3106_v11  ;;  %v3380_v58 = vmul.f32 %v4697_v5, %v3375_v56 }
 0x9e0   : > { %v3381_v20 = vadd.f32 %v3380_v58, %v3111_v57  ;;  %v3596_v62 = vpop.permute.xlu1 %3595  ;;  %v3624_v60 = vpop.permute.xlu0 %3623 }
 0x9e1   : > { %v3636_v2 = vsel %vm3089_vm13, %v3635_v63, %v3596_v62 }
 0x9e2   : > { %v3637_v28 = vsel %vm3091_vm14, %v3636_v2, %v3600_v46 }
 0x9e4   : > { %v3604_v53 = vpop.permute.xlu1 %3603 }
 0x9e5   : > { %v3638_v49 = vsel %vm3093_vm15, %v3637_v28, %v3604_v53 }
 0x9e6   : > { %v3639_v5 = vsel %vm3095_vm0, %v3638_v49, %v3608_v27 }
 0x9e8   : > { %v3612_v1 = vpop.permute.xlu1 %3611 }
 0x9e9   : > { %v3640_v8 = vsel %vm3097_vm1, %v3639_v5, %v3612_v1 }
 0x9ea   : > { %v3641_v54 = vsel %vm3099_vm4, %v3640_v8, %v3616_v48 }
 0x9ec   : > { %v3620_v21 = vpop.permute.xlu1 %3619 }
 0x9ed   : > { %v3642_v47 = vsel %vm3101_vm5, %v3641_v54, %v3620_v21 }
 0x9ee   : > { %v3643_v16 = vsel %vm3103_vm6, %v3642_v47, %v3624_v60 }
 0x9f0   : > { %v3628_v13 = vpop.permute.xlu1 %3627 }
 0x9f1   : > { %v3644_v14 = vsel %vm3105_vm7, %v3643_v16, %v3628_v13 }
 0x9f2   : > { %v3649_v3 = vmul.f32 %v3648_v4, %v3644_v14 }
 0x9f4   : > { %v3650_v19 = vadd.f32 %v3649_v3, %v3381_v20 }
 0x9f6   : > { %v3665_v23 = vadd.f32 %v3664_v18, %v3650_v19 }
 0x9f8   : > { %3666 = vst [vmem:[%s352_s16] sm:$0xf] %v3665_v23 }
 0x9f9   : > { %4322 = shalt.err (!%p4319_p4)
}
 0x9fa   : > { %s4323_s0 = scalar_lea.hbm %s5013_s17, 64  ;;  %s4327_s14 = scalar_lea.hbm %s5064_s9, 128 }
 0x9fb   : > { %p4324_p7 = scmp.ne.s32.totalorder %s5013_s17, %s4323_s0  ;;  %p4328_p10 = scmp.lt.u32.totalorder %s5013_s17, %s5064_s9 }
 0x9fc   : > { %p4329_p11 = scmp.lt.u32.totalorder %s4327_s14, %s4323_s0  ;;  %p4331_p13 = scmp.lt.u32.totalorder %s4323_s0, %s5013_s17 }
 0x9fd   : > { %p4325_p8 = pnand %p4324_p7, %p4484_p5 }
 0x9fe   : > { %p4330_p12 = por %p4329_p11, %p4328_p10 }
 0x9ff   : > { %p4326_p9 = pneg %p4325_p8 }
 0xa00   : > { %p4332_p0 = por %p4331_p13, %p4330_p12 }
 0xa02   : > { %p4333_p1 = pnand %p4332_p0, %p4326_p9 }
 0xa04   : > { %4336 = shalt.err (!%p4333_p1)
}
 0xa05   : > { %4222 = dma.vmem_to_hbm [thread:$0]  (%p4484_p5), %s5015_s21, 64, %s5013_s17, %s3668_s23  }
 0xa06 PF: > { %p4228_p2 = scmp.ge.s32.totalorder %s4371_s12, 2  ;;  %s3693_s27 = sand.u32 1, %s4359_s30  }
 0xa07   : > { %s3694_s16 = scalar_lea.sflag [#allocation3], %s3693_s27 }
 0xa08   : > { %p4225_p3 = pnand %p4228_p2, %p4488_p6 }
 0xa0a   : > { %4354 = dma.done.wait (!%p4225_p3), %s3694_s16, 64  }
 0xa0b   : > { %4356 = vsyncadd (!%p4225_p3), %s3694_s16, 4294967232  ;;  %p19_p4 = scmp.ge.s32.totalorder %s4471_s15, 4   ;;  %s5120_s30 = smov %s4363_s10 }
 0xa0c   : > { %s5121_s10 = smov %s4367_s11  ;;  %s5122_s11 = smov %s4482_s18 }
 0xa0d   : > { %s5123_s12 = smov %s4471_s15  ;;  %21 = sbr.rel (!%p19_p4) target bundleno = 8 (0x8), region = 97 }
 0xa14   :  { %3699 = vsyncpa [#allocation3], 1 }
 0xa15   :  { %3701 = vsyncpa [#allocation3 + $0x1], 1 }

</bundles_post_ra>
